<compile_context>
chip_gen: v5e
topology: v5e:2x2
jax: 0.10.0
libtpu: 0.0.40
codegen_flags: <defaults>
</compile_context>

<pallas_src>
import numpy as np
import jax
import jax.numpy as jnp
from jax import lax
from jax.experimental import pallas as pl
from jax.experimental.pallas import tpu as pltpu

SUBLANES = 8
LANES = 128
TILE = SUBLANES * LANES  # 1024 samples per grid step


def ds_forward_kernel(x_ref, thr_ref, masses_ref, out_ref):
    # x_ref:      (F, 8, 128) f32 VMEM  - one 1024-sample tile, feature-major
    # thr_ref:    (2F,)       f32 SMEM  - per-feature [v1, v2]
    # masses_ref: (15F,)      f32 SMEM  - per-rule [ma, mb, mab, ma+mab, mb+mab]
    #                                     (3 threshold rules per feature)
    # out_ref:    (2, 8, 128) f32 VMEM  - softmax([a_final, b_final]) per sample
    F = x_ref.shape[0]
    SUB, LN = x_ref.shape[1], x_ref.shape[2]

    def combine(rule_off, mask, carry):
        a, b, ab, started = carry                 # (8,128) f32 x3, (8,128) bool
        ma = masses_ref[rule_off + 0]             # scalar SMEM reads
        mb = masses_ref[rule_off + 1]
        mab = masses_ref[rule_off + 2]
        ma_pab = masses_ref[rule_off + 3]         # ma + mab (precomputed)
        mb_pab = masses_ref[rule_off + 4]         # mb + mab (precomputed)

        # dempster_rule_t(mf, m_rule, normalize=True)
        na = a * ma_pab + ab * ma
        nb = b * mb_pab + ab * mb
        nab = ab * mab
        tot = na + nb + nab
        inv = pl.reciprocal(tot, approx=True)
        inv = inv * (2.0 - tot * inv)             # one Newton step -> ~f32-exact
        na = na * inv
        nb = nb * inv
        nab = nab * inv

        # first selected rule takes the raw (un-normalized) mass, later selected
        # rules combine with the running mf, unselected rules keep it.
        a2 = jnp.where(mask, jnp.where(started, na, ma), a)
        b2 = jnp.where(mask, jnp.where(started, nb, mb), b)
        ab2 = jnp.where(mask, jnp.where(started, nab, mab), ab)
        return (a2, b2, ab2, jnp.logical_or(started, mask))

    def body(f, carry):
        xv = x_ref[f]                             # (8,128) samples for feature f
        v1 = thr_ref[2 * f]
        v2 = thr_ref[2 * f + 1]
        low = xv <= v1                            # rule 3f:   x <= v1
        mid = jnp.logical_and(xv >= v1, xv < v2)  # rule 3f+1: v1 <= x < v2
        high = xv > v2                            # rule 3f+2: x > v2
        base = 15 * f
        carry = combine(base, low, carry)
        carry = combine(base + 5, mid, carry)
        carry = combine(base + 10, high, carry)
        return carry

    zeros = jnp.zeros((SUB, LN), jnp.float32)
    init = (zeros, zeros, jnp.ones((SUB, LN), jnp.float32),
            jnp.zeros((SUB, LN), jnp.bool_))
    a, b, _, _ = lax.fori_loop(0, F, body, init, unroll=True)

    # TODO(synk): torch raises RuntimeError for samples with no selected rule;
    # a data-dependent host-side exception has no Pallas equivalent (such lanes
    # and padded lanes simply yield softmax(0,0) = [0.5, 0.5]).

    # use_softmax=True: Softmax(dim=0) over mf[:2]; for 2 classes this is a sigmoid.
    e = jnp.exp(b - a)
    den = 1.0 + e
    inv = pl.reciprocal(den, approx=True)
    inv = inv * (2.0 - den * inv)
    out_ref[0:1, :, :] = inv[None, :, :]
    out_ref[1:2, :, :] = (e * inv)[None, :, :]


def ds_model_forward(x, masses, thresholds):
    """
    x:          (N, F) f32 inputs
    masses:     (R, 3) f32, R = 3*F rules (statistic-single-rule style), [ma, mb, mab]
    thresholds: (F, 2) f32, per-feature break values (v1, v2)
    returns:    (N, 2) f32 one-hot-style class scores
    """
    N, F = x.shape
    R = masses.shape[0]
    assert R == 3 * F, "expected 3 threshold rules per feature"

    # Hoist (ma+mab), (mb+mab) and flatten to 1-D so SMEM does not pad a 2-D table.
    ma, mb, mab = masses[:, 0], masses[:, 1], masses[:, 2]
    masses_packed = jnp.stack([ma, mb, mab, ma + mab, mb + mab], axis=1).reshape(-1)
    thr_flat = thresholds.astype(jnp.float32).reshape(-1)      # [v1_0, v2_0, v1_1, ...]

    # Batch laid out as full (8,128) vregs: pad to a multiple of 1024 samples and
    # present x feature-major so each grid step covers one 1024-sample tile.
    ntiles = max(1, (N + TILE - 1) // TILE)
    npad = ntiles * TILE
    x_t = jnp.zeros((F, npad), jnp.float32).at[:, :N].set(x.T)
    x_tiled = x_t.reshape(F, ntiles * SUBLANES, LANES)

    out = pl.pallas_call(
        ds_forward_kernel,
        out_shape=jax.ShapeDtypeStruct((2, ntiles * SUBLANES, LANES), jnp.float32),
        grid_spec=pltpu.PrefetchScalarGridSpec(
            num_scalar_prefetch=0,
            grid=(ntiles,),
            in_specs=[
                pl.BlockSpec((F, SUBLANES, LANES), lambda i: (0, i, 0)),
                pl.BlockSpec(memory_space=pltpu.MemorySpace.SMEM),
                pl.BlockSpec(memory_space=pltpu.MemorySpace.SMEM),
            ],
            out_specs=pl.BlockSpec((2, SUBLANES, LANES), lambda i: (0, i, 0)),
        ),
        compiler_params=pltpu.CompilerParams(dimension_semantics=("parallel",)),
    )(x_tiled, thr_flat, masses_packed)

    return out.reshape(2, npad)[:, :N].T  # (N, 2)


def _reference_forward(x, masses, thresholds):
    """Pure-numpy replica of the torch forward (per-sample sequential Dempster combine)."""
    x = np.asarray(x)
    masses = np.asarray(masses)
    thresholds = np.asarray(thresholds)
    N, F = x.shape
    out = np.zeros((N, 2), np.float32)
    for n in range(N):
        sel = []
        for f in range(F):
            v1, v2 = thresholds[f]
            if x[n, f] <= v1:
                sel.append(3 * f + 0)
            if v1 <= x[n, f] < v2:
                sel.append(3 * f + 1)
            if x[n, f] > v2:
                sel.append(3 * f + 2)
        assert len(sel) > 0
        mf = masses[sel[0]].astype(np.float64).copy()
        for j in sel[1:]:
            m2 = masses[j].astype(np.float64)
            a = mf[0] * m2[0] + mf[0] * m2[2] + mf[2] * m2[0]
            b = mf[1] * m2[1] + mf[1] * m2[2] + mf[2] * m2[1]
            ab = mf[2] * m2[2]
            mf = np.array([a, b, ab]) / (a + b + ab)
        e = np.exp(mf[:2] - np.max(mf[:2]))
        out[n] = (e / e.sum()).astype(np.float32)
    return out


if __name__ == "__main__":
    key = jax.random.PRNGKey(0)
    kx, km = jax.random.split(key)

    N, F = 8, 4                       # batch=8 samples, 4 features
    x = jax.random.normal(kx, (N, F), jnp.float32)

    # generate_statistic_single_rules(breaks=2)-style thresholds: mean +/- z*std
    mean = jnp.mean(x, axis=0)
    std = jnp.std(x, axis=0)
    z = 0.4307273                     # ~ norm.ppf(linspace(0,1,4)[2])
    thresholds = jnp.stack([mean - z * std, mean + z * std], axis=-1)  # (F, 2)

    # deterministic masses (create_random_maf analogue): positive, summing to 1 per rule
    R = 3 * F
    raw = jax.random.uniform(km, (R, 3), jnp.float32, minval=0.05, maxval=1.0)
    masses = raw / jnp.sum(raw, axis=1, keepdims=True)

    out = jax.block_until_ready(ds_model_forward(x, masses, thresholds))

    ref = _reference_forward(x, masses, thresholds)
    np.testing.assert_allclose(np.asarray(out), ref, rtol=1e-5, atol=1e-5)
    print("KERNEL_OK")
</pallas_src>

<mosaic_0001>
module attributes {stable_mosaic.version = 11 : i64} {
  func.func @ds_forward_kernel(%arg0: i32, %arg1: memref<4x8x128xf32, #tpu.memory_space<vmem>>, %arg2: memref<8xf32, #tpu.memory_space<smem>>, %arg3: memref<60xf32, #tpu.memory_space<smem>>, %arg4: memref<2x8x128xf32, #tpu.memory_space<vmem>>) attributes {dimension_semantics = [#tpu.dimension_semantics<parallel>], iteration_bounds = array<i64: 1>, scalar_prefetch = 0 : i64, scratch_operands = 0 : i64, tpu.core_type = #tpu.core_type<tc>, window_params = [{transform_indices = @transform_0, window_bounds = array<i64: 4, 8, 128>}, {transform_indices = @transform_1, window_bounds = array<i64: 8>}, {transform_indices = @transform_2, window_bounds = array<i64: 60>}, {transform_indices = @transform_3, window_bounds = array<i64: 2, 8, 128>}]} {
    %cst = arith.constant 0.000000e+00 : f32
    %0 = vector.broadcast %cst : f32 to vector<8x128xf32>
    %cst_0 = arith.constant 1.000000e+00 : f32
    %1 = vector.broadcast %cst_0 : f32 to vector<8x128xf32>
    %false = arith.constant false
    %2 = vector.broadcast %false : i1 to vector<8x128xi1>
    %c0_i32 = arith.constant 0 : i32
    %3 = arith.index_cast %c0_i32 : i32 to index
    %c0 = arith.constant 0 : index
    %c0_1 = arith.constant 0 : index
    %4 = vector.load %arg1[%3, %c0, %c0_1] : memref<4x8x128xf32, #tpu.memory_space<vmem>>, vector<1x8x128xf32>
    %5 = vector.shape_cast %4 : vector<1x8x128xf32> to vector<8x128xf32>
    %c2_i32 = arith.constant 2 : i32
    %6 = arith.muli %c2_i32, %c0_i32 : i32
    %7 = arith.index_cast %6 : i32 to index
    %8 = memref.load %arg2[%7] : memref<8xf32, #tpu.memory_space<smem>>
    %c2_i32_2 = arith.constant 2 : i32
    %9 = arith.muli %c2_i32_2, %c0_i32 : i32
    %c1_i32 = arith.constant 1 : i32
    %10 = arith.addi %9, %c1_i32 : i32
    %11 = arith.index_cast %10 : i32 to index
    %12 = memref.load %arg2[%11] : memref<8xf32, #tpu.memory_space<smem>>
    %13 = vector.broadcast %8 : f32 to vector<8x128xf32>
    %14 = arith.cmpf ole, %5, %13 : vector<8x128xf32>
    %15 = vector.broadcast %8 : f32 to vector<8x128xf32>
    %16 = arith.cmpf oge, %5, %15 : vector<8x128xf32>
    %17 = vector.broadcast %12 : f32 to vector<8x128xf32>
    %18 = arith.cmpf olt, %5, %17 : vector<8x128xf32>
    %19 = arith.andi %16, %18 : vector<8x128xi1>
    %20 = vector.broadcast %12 : f32 to vector<8x128xf32>
    %21 = arith.cmpf ogt, %5, %20 : vector<8x128xf32>
    %c15_i32 = arith.constant 15 : i32
    %22 = arith.muli %c15_i32, %c0_i32 : i32
    %c0_i32_3 = arith.constant 0 : i32
    %23 = arith.addi %22, %c0_i32_3 : i32
    %24 = arith.index_cast %23 : i32 to index
    %25 = memref.load %arg3[%24] : memref<60xf32, #tpu.memory_space<smem>>
    %c1_i32_4 = arith.constant 1 : i32
    %26 = arith.addi %22, %c1_i32_4 : i32
    %27 = arith.index_cast %26 : i32 to index
    %28 = memref.load %arg3[%27] : memref<60xf32, #tpu.memory_space<smem>>
    %c2_i32_5 = arith.constant 2 : i32
    %29 = arith.addi %22, %c2_i32_5 : i32
    %30 = arith.index_cast %29 : i32 to index
    %31 = memref.load %arg3[%30] : memref<60xf32, #tpu.memory_space<smem>>
    %c3_i32 = arith.constant 3 : i32
    %32 = arith.addi %22, %c3_i32 : i32
    %33 = arith.index_cast %32 : i32 to index
    %34 = memref.load %arg3[%33] : memref<60xf32, #tpu.memory_space<smem>>
    %c4_i32 = arith.constant 4 : i32
    %35 = arith.addi %22, %c4_i32 : i32
    %36 = arith.index_cast %35 : i32 to index
    %37 = memref.load %arg3[%36] : memref<60xf32, #tpu.memory_space<smem>>
    %38 = vector.broadcast %34 : f32 to vector<8x128xf32>
    %39 = arith.mulf %0, %38 : vector<8x128xf32>
    %40 = vector.broadcast %25 : f32 to vector<8x128xf32>
    %41 = arith.mulf %1, %40 : vector<8x128xf32>
    %42 = arith.addf %39, %41 : vector<8x128xf32>
    %43 = vector.broadcast %37 : f32 to vector<8x128xf32>
    %44 = arith.mulf %0, %43 : vector<8x128xf32>
    %45 = vector.broadcast %28 : f32 to vector<8x128xf32>
    %46 = arith.mulf %1, %45 : vector<8x128xf32>
    %47 = arith.addf %44, %46 : vector<8x128xf32>
    %48 = vector.broadcast %31 : f32 to vector<8x128xf32>
    %49 = arith.mulf %1, %48 : vector<8x128xf32>
    %50 = arith.addf %42, %47 : vector<8x128xf32>
    %51 = arith.addf %50, %49 : vector<8x128xf32>
    %52 = tpu.reciprocal %51 {approx = true} : vector<8x128xf32> -> vector<8x128xf32>
    %53 = arith.mulf %51, %52 : vector<8x128xf32>
    %cst_6 = arith.constant 2.000000e+00 : f32
    %54 = vector.broadcast %cst_6 : f32 to vector<8x128xf32>
    %55 = arith.subf %54, %53 : vector<8x128xf32>
    %56 = arith.mulf %52, %55 : vector<8x128xf32>
    %57 = arith.mulf %42, %56 : vector<8x128xf32>
    %58 = arith.mulf %47, %56 : vector<8x128xf32>
    %59 = arith.mulf %49, %56 : vector<8x128xf32>
    %60 = vector.broadcast %25 : f32 to vector<8x128xf32>
    %61 = arith.select %2, %57, %60 : vector<8x128xi1>, vector<8x128xf32>
    %62 = arith.select %14, %61, %0 : vector<8x128xi1>, vector<8x128xf32>
    %63 = vector.broadcast %28 : f32 to vector<8x128xf32>
    %64 = arith.select %2, %58, %63 : vector<8x128xi1>, vector<8x128xf32>
    %65 = arith.select %14, %64, %0 : vector<8x128xi1>, vector<8x128xf32>
    %66 = vector.broadcast %31 : f32 to vector<8x128xf32>
    %67 = arith.select %2, %59, %66 : vector<8x128xi1>, vector<8x128xf32>
    %68 = arith.select %14, %67, %1 : vector<8x128xi1>, vector<8x128xf32>
    %69 = arith.ori %2, %14 : vector<8x128xi1>
    %c5_i32 = arith.constant 5 : i32
    %70 = arith.addi %22, %c5_i32 : i32
    %c0_i32_7 = arith.constant 0 : i32
    %71 = arith.addi %70, %c0_i32_7 : i32
    %72 = arith.index_cast %71 : i32 to index
    %73 = memref.load %arg3[%72] : memref<60xf32, #tpu.memory_space<smem>>
    %c1_i32_8 = arith.constant 1 : i32
    %74 = arith.addi %70, %c1_i32_8 : i32
    %75 = arith.index_cast %74 : i32 to index
    %76 = memref.load %arg3[%75] : memref<60xf32, #tpu.memory_space<smem>>
    %c2_i32_9 = arith.constant 2 : i32
    %77 = arith.addi %70, %c2_i32_9 : i32
    %78 = arith.index_cast %77 : i32 to index
    %79 = memref.load %arg3[%78] : memref<60xf32, #tpu.memory_space<smem>>
    %c3_i32_10 = arith.constant 3 : i32
    %80 = arith.addi %70, %c3_i32_10 : i32
    %81 = arith.index_cast %80 : i32 to index
    %82 = memref.load %arg3[%81] : memref<60xf32, #tpu.memory_space<smem>>
    %c4_i32_11 = arith.constant 4 : i32
    %83 = arith.addi %70, %c4_i32_11 : i32
    %84 = arith.index_cast %83 : i32 to index
    %85 = memref.load %arg3[%84] : memref<60xf32, #tpu.memory_space<smem>>
    %86 = vector.broadcast %82 : f32 to vector<8x128xf32>
    %87 = arith.mulf %62, %86 : vector<8x128xf32>
    %88 = vector.broadcast %73 : f32 to vector<8x128xf32>
    %89 = arith.mulf %68, %88 : vector<8x128xf32>
    %90 = arith.addf %87, %89 : vector<8x128xf32>
    %91 = vector.broadcast %85 : f32 to vector<8x128xf32>
    %92 = arith.mulf %65, %91 : vector<8x128xf32>
    %93 = vector.broadcast %76 : f32 to vector<8x128xf32>
    %94 = arith.mulf %68, %93 : vector<8x128xf32>
    %95 = arith.addf %92, %94 : vector<8x128xf32>
    %96 = vector.broadcast %79 : f32 to vector<8x128xf32>
    %97 = arith.mulf %68, %96 : vector<8x128xf32>
    %98 = arith.addf %90, %95 : vector<8x128xf32>
    %99 = arith.addf %98, %97 : vector<8x128xf32>
    %100 = tpu.reciprocal %99 {approx = true} : vector<8x128xf32> -> vector<8x128xf32>
    %101 = arith.mulf %99, %100 : vector<8x128xf32>
    %cst_12 = arith.constant 2.000000e+00 : f32
    %102 = vector.broadcast %cst_12 : f32 to vector<8x128xf32>
    %103 = arith.subf %102, %101 : vector<8x128xf32>
    %104 = arith.mulf %100, %103 : vector<8x128xf32>
    %105 = arith.mulf %90, %104 : vector<8x128xf32>
    %106 = arith.mulf %95, %104 : vector<8x128xf32>
    %107 = arith.mulf %97, %104 : vector<8x128xf32>
    %108 = vector.broadcast %73 : f32 to vector<8x128xf32>
    %109 = arith.select %69, %105, %108 : vector<8x128xi1>, vector<8x128xf32>
    %110 = arith.select %19, %109, %62 : vector<8x128xi1>, vector<8x128xf32>
    %111 = vector.broadcast %76 : f32 to vector<8x128xf32>
    %112 = arith.select %69, %106, %111 : vector<8x128xi1>, vector<8x128xf32>
    %113 = arith.select %19, %112, %65 : vector<8x128xi1>, vector<8x128xf32>
    %114 = vector.broadcast %79 : f32 to vector<8x128xf32>
    %115 = arith.select %69, %107, %114 : vector<8x128xi1>, vector<8x128xf32>
    %116 = arith.select %19, %115, %68 : vector<8x128xi1>, vector<8x128xf32>
    %117 = arith.ori %69, %19 : vector<8x128xi1>
    %c10_i32 = arith.constant 10 : i32
    %118 = arith.addi %22, %c10_i32 : i32
    %c0_i32_13 = arith.constant 0 : i32
    %119 = arith.addi %118, %c0_i32_13 : i32
    %120 = arith.index_cast %119 : i32 to index
    %121 = memref.load %arg3[%120] : memref<60xf32, #tpu.memory_space<smem>>
    %c1_i32_14 = arith.constant 1 : i32
    %122 = arith.addi %118, %c1_i32_14 : i32
    %123 = arith.index_cast %122 : i32 to index
    %124 = memref.load %arg3[%123] : memref<60xf32, #tpu.memory_space<smem>>
    %c2_i32_15 = arith.constant 2 : i32
    %125 = arith.addi %118, %c2_i32_15 : i32
    %126 = arith.index_cast %125 : i32 to index
    %127 = memref.load %arg3[%126] : memref<60xf32, #tpu.memory_space<smem>>
    %c3_i32_16 = arith.constant 3 : i32
    %128 = arith.addi %118, %c3_i32_16 : i32
    %129 = arith.index_cast %128 : i32 to index
    %130 = memref.load %arg3[%129] : memref<60xf32, #tpu.memory_space<smem>>
    %c4_i32_17 = arith.constant 4 : i32
    %131 = arith.addi %118, %c4_i32_17 : i32
    %132 = arith.index_cast %131 : i32 to index
    %133 = memref.load %arg3[%132] : memref<60xf32, #tpu.memory_space<smem>>
    %134 = vector.broadcast %130 : f32 to vector<8x128xf32>
    %135 = arith.mulf %110, %134 : vector<8x128xf32>
    %136 = vector.broadcast %121 : f32 to vector<8x128xf32>
    %137 = arith.mulf %116, %136 : vector<8x128xf32>
    %138 = arith.addf %135, %137 : vector<8x128xf32>
    %139 = vector.broadcast %133 : f32 to vector<8x128xf32>
    %140 = arith.mulf %113, %139 : vector<8x128xf32>
    %141 = vector.broadcast %124 : f32 to vector<8x128xf32>
    %142 = arith.mulf %116, %141 : vector<8x128xf32>
    %143 = arith.addf %140, %142 : vector<8x128xf32>
    %144 = vector.broadcast %127 : f32 to vector<8x128xf32>
    %145 = arith.mulf %116, %144 : vector<8x128xf32>
    %146 = arith.addf %138, %143 : vector<8x128xf32>
    %147 = arith.addf %146, %145 : vector<8x128xf32>
    %148 = tpu.reciprocal %147 {approx = true} : vector<8x128xf32> -> vector<8x128xf32>
    %149 = arith.mulf %147, %148 : vector<8x128xf32>
    %cst_18 = arith.constant 2.000000e+00 : f32
    %150 = vector.broadcast %cst_18 : f32 to vector<8x128xf32>
    %151 = arith.subf %150, %149 : vector<8x128xf32>
    %152 = arith.mulf %148, %151 : vector<8x128xf32>
    %153 = arith.mulf %138, %152 : vector<8x128xf32>
    %154 = arith.mulf %143, %152 : vector<8x128xf32>
    %155 = arith.mulf %145, %152 : vector<8x128xf32>
    %156 = vector.broadcast %121 : f32 to vector<8x128xf32>
    %157 = arith.select %117, %153, %156 : vector<8x128xi1>, vector<8x128xf32>
    %158 = arith.select %21, %157, %110 : vector<8x128xi1>, vector<8x128xf32>
    %159 = vector.broadcast %124 : f32 to vector<8x128xf32>
    %160 = arith.select %117, %154, %159 : vector<8x128xi1>, vector<8x128xf32>
    %161 = arith.select %21, %160, %113 : vector<8x128xi1>, vector<8x128xf32>
    %162 = vector.broadcast %127 : f32 to vector<8x128xf32>
    %163 = arith.select %117, %155, %162 : vector<8x128xi1>, vector<8x128xf32>
    %164 = arith.select %21, %163, %116 : vector<8x128xi1>, vector<8x128xf32>
    %165 = arith.ori %117, %21 : vector<8x128xi1>
    %c1_i32_19 = arith.constant 1 : i32
    %166 = arith.index_cast %c1_i32_19 : i32 to index
    %c0_20 = arith.constant 0 : index
    %c0_21 = arith.constant 0 : index
    %167 = vector.load %arg1[%166, %c0_20, %c0_21] : memref<4x8x128xf32, #tpu.memory_space<vmem>>, vector<1x8x128xf32>
    %168 = vector.shape_cast %167 : vector<1x8x128xf32> to vector<8x128xf32>
    %c2_i32_22 = arith.constant 2 : i32
    %169 = arith.muli %c2_i32_22, %c1_i32_19 : i32
    %170 = arith.index_cast %169 : i32 to index
    %171 = memref.load %arg2[%170] : memref<8xf32, #tpu.memory_space<smem>>
    %c2_i32_23 = arith.constant 2 : i32
    %172 = arith.muli %c2_i32_23, %c1_i32_19 : i32
    %c1_i32_24 = arith.constant 1 : i32
    %173 = arith.addi %172, %c1_i32_24 : i32
    %174 = arith.index_cast %173 : i32 to index
    %175 = memref.load %arg2[%174] : memref<8xf32, #tpu.memory_space<smem>>
    %176 = vector.broadcast %171 : f32 to vector<8x128xf32>
    %177 = arith.cmpf ole, %168, %176 : vector<8x128xf32>
    %178 = vector.broadcast %171 : f32 to vector<8x128xf32>
    %179 = arith.cmpf oge, %168, %178 : vector<8x128xf32>
    %180 = vector.broadcast %175 : f32 to vector<8x128xf32>
    %181 = arith.cmpf olt, %168, %180 : vector<8x128xf32>
    %182 = arith.andi %179, %181 : vector<8x128xi1>
    %183 = vector.broadcast %175 : f32 to vector<8x128xf32>
    %184 = arith.cmpf ogt, %168, %183 : vector<8x128xf32>
    %c15_i32_25 = arith.constant 15 : i32
    %185 = arith.muli %c15_i32_25, %c1_i32_19 : i32
    %c0_i32_26 = arith.constant 0 : i32
    %186 = arith.addi %185, %c0_i32_26 : i32
    %187 = arith.index_cast %186 : i32 to index
    %188 = memref.load %arg3[%187] : memref<60xf32, #tpu.memory_space<smem>>
    %c1_i32_27 = arith.constant 1 : i32
    %189 = arith.addi %185, %c1_i32_27 : i32
    %190 = arith.index_cast %189 : i32 to index
    %191 = memref.load %arg3[%190] : memref<60xf32, #tpu.memory_space<smem>>
    %c2_i32_28 = arith.constant 2 : i32
    %192 = arith.addi %185, %c2_i32_28 : i32
    %193 = arith.index_cast %192 : i32 to index
    %194 = memref.load %arg3[%193] : memref<60xf32, #tpu.memory_space<smem>>
    %c3_i32_29 = arith.constant 3 : i32
    %195 = arith.addi %185, %c3_i32_29 : i32
    %196 = arith.index_cast %195 : i32 to index
    %197 = memref.load %arg3[%196] : memref<60xf32, #tpu.memory_space<smem>>
    %c4_i32_30 = arith.constant 4 : i32
    %198 = arith.addi %185, %c4_i32_30 : i32
    %199 = arith.index_cast %198 : i32 to index
    %200 = memref.load %arg3[%199] : memref<60xf32, #tpu.memory_space<smem>>
    %201 = vector.broadcast %197 : f32 to vector<8x128xf32>
    %202 = arith.mulf %158, %201 : vector<8x128xf32>
    %203 = vector.broadcast %188 : f32 to vector<8x128xf32>
    %204 = arith.mulf %164, %203 : vector<8x128xf32>
    %205 = arith.addf %202, %204 : vector<8x128xf32>
    %206 = vector.broadcast %200 : f32 to vector<8x128xf32>
    %207 = arith.mulf %161, %206 : vector<8x128xf32>
    %208 = vector.broadcast %191 : f32 to vector<8x128xf32>
    %209 = arith.mulf %164, %208 : vector<8x128xf32>
    %210 = arith.addf %207, %209 : vector<8x128xf32>
    %211 = vector.broadcast %194 : f32 to vector<8x128xf32>
    %212 = arith.mulf %164, %211 : vector<8x128xf32>
    %213 = arith.addf %205, %210 : vector<8x128xf32>
    %214 = arith.addf %213, %212 : vector<8x128xf32>
    %215 = tpu.reciprocal %214 {approx = true} : vector<8x128xf32> -> vector<8x128xf32>
    %216 = arith.mulf %214, %215 : vector<8x128xf32>
    %cst_31 = arith.constant 2.000000e+00 : f32
    %217 = vector.broadcast %cst_31 : f32 to vector<8x128xf32>
    %218 = arith.subf %217, %216 : vector<8x128xf32>
    %219 = arith.mulf %215, %218 : vector<8x128xf32>
    %220 = arith.mulf %205, %219 : vector<8x128xf32>
    %221 = arith.mulf %210, %219 : vector<8x128xf32>
    %222 = arith.mulf %212, %219 : vector<8x128xf32>
    %223 = vector.broadcast %188 : f32 to vector<8x128xf32>
    %224 = arith.select %165, %220, %223 : vector<8x128xi1>, vector<8x128xf32>
    %225 = arith.select %177, %224, %158 : vector<8x128xi1>, vector<8x128xf32>
    %226 = vector.broadcast %191 : f32 to vector<8x128xf32>
    %227 = arith.select %165, %221, %226 : vector<8x128xi1>, vector<8x128xf32>
    %228 = arith.select %177, %227, %161 : vector<8x128xi1>, vector<8x128xf32>
    %229 = vector.broadcast %194 : f32 to vector<8x128xf32>
    %230 = arith.select %165, %222, %229 : vector<8x128xi1>, vector<8x128xf32>
    %231 = arith.select %177, %230, %164 : vector<8x128xi1>, vector<8x128xf32>
    %232 = arith.ori %165, %177 : vector<8x128xi1>
    %c5_i32_32 = arith.constant 5 : i32
    %233 = arith.addi %185, %c5_i32_32 : i32
    %c0_i32_33 = arith.constant 0 : i32
    %234 = arith.addi %233, %c0_i32_33 : i32
    %235 = arith.index_cast %234 : i32 to index
    %236 = memref.load %arg3[%235] : memref<60xf32, #tpu.memory_space<smem>>
    %c1_i32_34 = arith.constant 1 : i32
    %237 = arith.addi %233, %c1_i32_34 : i32
    %238 = arith.index_cast %237 : i32 to index
    %239 = memref.load %arg3[%238] : memref<60xf32, #tpu.memory_space<smem>>
    %c2_i32_35 = arith.constant 2 : i32
    %240 = arith.addi %233, %c2_i32_35 : i32
    %241 = arith.index_cast %240 : i32 to index
    %242 = memref.load %arg3[%241] : memref<60xf32, #tpu.memory_space<smem>>
    %c3_i32_36 = arith.constant 3 : i32
    %243 = arith.addi %233, %c3_i32_36 : i32
    %244 = arith.index_cast %243 : i32 to index
    %245 = memref.load %arg3[%244] : memref<60xf32, #tpu.memory_space<smem>>
    %c4_i32_37 = arith.constant 4 : i32
    %246 = arith.addi %233, %c4_i32_37 : i32
    %247 = arith.index_cast %246 : i32 to index
    %248 = memref.load %arg3[%247] : memref<60xf32, #tpu.memory_space<smem>>
    %249 = vector.broadcast %245 : f32 to vector<8x128xf32>
    %250 = arith.mulf %225, %249 : vector<8x128xf32>
    %251 = vector.broadcast %236 : f32 to vector<8x128xf32>
    %252 = arith.mulf %231, %251 : vector<8x128xf32>
    %253 = arith.addf %250, %252 : vector<8x128xf32>
    %254 = vector.broadcast %248 : f32 to vector<8x128xf32>
    %255 = arith.mulf %228, %254 : vector<8x128xf32>
    %256 = vector.broadcast %239 : f32 to vector<8x128xf32>
    %257 = arith.mulf %231, %256 : vector<8x128xf32>
    %258 = arith.addf %255, %257 : vector<8x128xf32>
    %259 = vector.broadcast %242 : f32 to vector<8x128xf32>
    %260 = arith.mulf %231, %259 : vector<8x128xf32>
    %261 = arith.addf %253, %258 : vector<8x128xf32>
    %262 = arith.addf %261, %260 : vector<8x128xf32>
    %263 = tpu.reciprocal %262 {approx = true} : vector<8x128xf32> -> vector<8x128xf32>
    %264 = arith.mulf %262, %263 : vector<8x128xf32>
    %cst_38 = arith.constant 2.000000e+00 : f32
    %265 = vector.broadcast %cst_38 : f32 to vector<8x128xf32>
    %266 = arith.subf %265, %264 : vector<8x128xf32>
    %267 = arith.mulf %263, %266 : vector<8x128xf32>
    %268 = arith.mulf %253, %267 : vector<8x128xf32>
    %269 = arith.mulf %258, %267 : vector<8x128xf32>
    %270 = arith.mulf %260, %267 : vector<8x128xf32>
    %271 = vector.broadcast %236 : f32 to vector<8x128xf32>
    %272 = arith.select %232, %268, %271 : vector<8x128xi1>, vector<8x128xf32>
    %273 = arith.select %182, %272, %225 : vector<8x128xi1>, vector<8x128xf32>
    %274 = vector.broadcast %239 : f32 to vector<8x128xf32>
    %275 = arith.select %232, %269, %274 : vector<8x128xi1>, vector<8x128xf32>
    %276 = arith.select %182, %275, %228 : vector<8x128xi1>, vector<8x128xf32>
    %277 = vector.broadcast %242 : f32 to vector<8x128xf32>
    %278 = arith.select %232, %270, %277 : vector<8x128xi1>, vector<8x128xf32>
    %279 = arith.select %182, %278, %231 : vector<8x128xi1>, vector<8x128xf32>
    %280 = arith.ori %232, %182 : vector<8x128xi1>
    %c10_i32_39 = arith.constant 10 : i32
    %281 = arith.addi %185, %c10_i32_39 : i32
    %c0_i32_40 = arith.constant 0 : i32
    %282 = arith.addi %281, %c0_i32_40 : i32
    %283 = arith.index_cast %282 : i32 to index
    %284 = memref.load %arg3[%283] : memref<60xf32, #tpu.memory_space<smem>>
    %c1_i32_41 = arith.constant 1 : i32
    %285 = arith.addi %281, %c1_i32_41 : i32
    %286 = arith.index_cast %285 : i32 to index
    %287 = memref.load %arg3[%286] : memref<60xf32, #tpu.memory_space<smem>>
    %c2_i32_42 = arith.constant 2 : i32
    %288 = arith.addi %281, %c2_i32_42 : i32
    %289 = arith.index_cast %288 : i32 to index
    %290 = memref.load %arg3[%289] : memref<60xf32, #tpu.memory_space<smem>>
    %c3_i32_43 = arith.constant 3 : i32
    %291 = arith.addi %281, %c3_i32_43 : i32
    %292 = arith.index_cast %291 : i32 to index
    %293 = memref.load %arg3[%292] : memref<60xf32, #tpu.memory_space<smem>>
    %c4_i32_44 = arith.constant 4 : i32
    %294 = arith.addi %281, %c4_i32_44 : i32
    %295 = arith.index_cast %294 : i32 to index
    %296 = memref.load %arg3[%295] : memref<60xf32, #tpu.memory_space<smem>>
    %297 = vector.broadcast %293 : f32 to vector<8x128xf32>
    %298 = arith.mulf %273, %297 : vector<8x128xf32>
    %299 = vector.broadcast %284 : f32 to vector<8x128xf32>
    %300 = arith.mulf %279, %299 : vector<8x128xf32>
    %301 = arith.addf %298, %300 : vector<8x128xf32>
    %302 = vector.broadcast %296 : f32 to vector<8x128xf32>
    %303 = arith.mulf %276, %302 : vector<8x128xf32>
    %304 = vector.broadcast %287 : f32 to vector<8x128xf32>
    %305 = arith.mulf %279, %304 : vector<8x128xf32>
    %306 = arith.addf %303, %305 : vector<8x128xf32>
    %307 = vector.broadcast %290 : f32 to vector<8x128xf32>
    %308 = arith.mulf %279, %307 : vector<8x128xf32>
    %309 = arith.addf %301, %306 : vector<8x128xf32>
    %310 = arith.addf %309, %308 : vector<8x128xf32>
    %311 = tpu.reciprocal %310 {approx = true} : vector<8x128xf32> -> vector<8x128xf32>
    %312 = arith.mulf %310, %311 : vector<8x128xf32>
    %cst_45 = arith.constant 2.000000e+00 : f32
    %313 = vector.broadcast %cst_45 : f32 to vector<8x128xf32>
    %314 = arith.subf %313, %312 : vector<8x128xf32>
    %315 = arith.mulf %311, %314 : vector<8x128xf32>
    %316 = arith.mulf %301, %315 : vector<8x128xf32>
    %317 = arith.mulf %306, %315 : vector<8x128xf32>
    %318 = arith.mulf %308, %315 : vector<8x128xf32>
    %319 = vector.broadcast %284 : f32 to vector<8x128xf32>
    %320 = arith.select %280, %316, %319 : vector<8x128xi1>, vector<8x128xf32>
    %321 = arith.select %184, %320, %273 : vector<8x128xi1>, vector<8x128xf32>
    %322 = vector.broadcast %287 : f32 to vector<8x128xf32>
    %323 = arith.select %280, %317, %322 : vector<8x128xi1>, vector<8x128xf32>
    %324 = arith.select %184, %323, %276 : vector<8x128xi1>, vector<8x128xf32>
    %325 = vector.broadcast %290 : f32 to vector<8x128xf32>
    %326 = arith.select %280, %318, %325 : vector<8x128xi1>, vector<8x128xf32>
    %327 = arith.select %184, %326, %279 : vector<8x128xi1>, vector<8x128xf32>
    %328 = arith.ori %280, %184 : vector<8x128xi1>
    %c2_i32_46 = arith.constant 2 : i32
    %329 = arith.index_cast %c2_i32_46 : i32 to index
    %c0_47 = arith.constant 0 : index
    %c0_48 = arith.constant 0 : index
    %330 = vector.load %arg1[%329, %c0_47, %c0_48] : memref<4x8x128xf32, #tpu.memory_space<vmem>>, vector<1x8x128xf32>
    %331 = vector.shape_cast %330 : vector<1x8x128xf32> to vector<8x128xf32>
    %c2_i32_49 = arith.constant 2 : i32
    %332 = arith.muli %c2_i32_49, %c2_i32_46 : i32
    %333 = arith.index_cast %332 : i32 to index
    %334 = memref.load %arg2[%333] : memref<8xf32, #tpu.memory_space<smem>>
    %c2_i32_50 = arith.constant 2 : i32
    %335 = arith.muli %c2_i32_50, %c2_i32_46 : i32
    %c1_i32_51 = arith.constant 1 : i32
    %336 = arith.addi %335, %c1_i32_51 : i32
    %337 = arith.index_cast %336 : i32 to index
    %338 = memref.load %arg2[%337] : memref<8xf32, #tpu.memory_space<smem>>
    %339 = vector.broadcast %334 : f32 to vector<8x128xf32>
    %340 = arith.cmpf ole, %331, %339 : vector<8x128xf32>
    %341 = vector.broadcast %334 : f32 to vector<8x128xf32>
    %342 = arith.cmpf oge, %331, %341 : vector<8x128xf32>
    %343 = vector.broadcast %338 : f32 to vector<8x128xf32>
    %344 = arith.cmpf olt, %331, %343 : vector<8x128xf32>
    %345 = arith.andi %342, %344 : vector<8x128xi1>
    %346 = vector.broadcast %338 : f32 to vector<8x128xf32>
    %347 = arith.cmpf ogt, %331, %346 : vector<8x128xf32>
    %c15_i32_52 = arith.constant 15 : i32
    %348 = arith.muli %c15_i32_52, %c2_i32_46 : i32
    %c0_i32_53 = arith.constant 0 : i32
    %349 = arith.addi %348, %c0_i32_53 : i32
    %350 = arith.index_cast %349 : i32 to index
    %351 = memref.load %arg3[%350] : memref<60xf32, #tpu.memory_space<smem>>
    %c1_i32_54 = arith.constant 1 : i32
    %352 = arith.addi %348, %c1_i32_54 : i32
    %353 = arith.index_cast %352 : i32 to index
    %354 = memref.load %arg3[%353] : memref<60xf32, #tpu.memory_space<smem>>
    %c2_i32_55 = arith.constant 2 : i32
    %355 = arith.addi %348, %c2_i32_55 : i32
    %356 = arith.index_cast %355 : i32 to index
    %357 = memref.load %arg3[%356] : memref<60xf32, #tpu.memory_space<smem>>
    %c3_i32_56 = arith.constant 3 : i32
    %358 = arith.addi %348, %c3_i32_56 : i32
    %359 = arith.index_cast %358 : i32 to index
    %360 = memref.load %arg3[%359] : memref<60xf32, #tpu.memory_space<smem>>
    %c4_i32_57 = arith.constant 4 : i32
    %361 = arith.addi %348, %c4_i32_57 : i32
    %362 = arith.index_cast %361 : i32 to index
    %363 = memref.load %arg3[%362] : memref<60xf32, #tpu.memory_space<smem>>
    %364 = vector.broadcast %360 : f32 to vector<8x128xf32>
    %365 = arith.mulf %321, %364 : vector<8x128xf32>
    %366 = vector.broadcast %351 : f32 to vector<8x128xf32>
    %367 = arith.mulf %327, %366 : vector<8x128xf32>
    %368 = arith.addf %365, %367 : vector<8x128xf32>
    %369 = vector.broadcast %363 : f32 to vector<8x128xf32>
    %370 = arith.mulf %324, %369 : vector<8x128xf32>
    %371 = vector.broadcast %354 : f32 to vector<8x128xf32>
    %372 = arith.mulf %327, %371 : vector<8x128xf32>
    %373 = arith.addf %370, %372 : vector<8x128xf32>
    %374 = vector.broadcast %357 : f32 to vector<8x128xf32>
    %375 = arith.mulf %327, %374 : vector<8x128xf32>
    %376 = arith.addf %368, %373 : vector<8x128xf32>
    %377 = arith.addf %376, %375 : vector<8x128xf32>
    %378 = tpu.reciprocal %377 {approx = true} : vector<8x128xf32> -> vector<8x128xf32>
    %379 = arith.mulf %377, %378 : vector<8x128xf32>
    %cst_58 = arith.constant 2.000000e+00 : f32
    %380 = vector.broadcast %cst_58 : f32 to vector<8x128xf32>
    %381 = arith.subf %380, %379 : vector<8x128xf32>
    %382 = arith.mulf %378, %381 : vector<8x128xf32>
    %383 = arith.mulf %368, %382 : vector<8x128xf32>
    %384 = arith.mulf %373, %382 : vector<8x128xf32>
    %385 = arith.mulf %375, %382 : vector<8x128xf32>
    %386 = vector.broadcast %351 : f32 to vector<8x128xf32>
    %387 = arith.select %328, %383, %386 : vector<8x128xi1>, vector<8x128xf32>
    %388 = arith.select %340, %387, %321 : vector<8x128xi1>, vector<8x128xf32>
    %389 = vector.broadcast %354 : f32 to vector<8x128xf32>
    %390 = arith.select %328, %384, %389 : vector<8x128xi1>, vector<8x128xf32>
    %391 = arith.select %340, %390, %324 : vector<8x128xi1>, vector<8x128xf32>
    %392 = vector.broadcast %357 : f32 to vector<8x128xf32>
    %393 = arith.select %328, %385, %392 : vector<8x128xi1>, vector<8x128xf32>
    %394 = arith.select %340, %393, %327 : vector<8x128xi1>, vector<8x128xf32>
    %395 = arith.ori %328, %340 : vector<8x128xi1>
    %c5_i32_59 = arith.constant 5 : i32
    %396 = arith.addi %348, %c5_i32_59 : i32
    %c0_i32_60 = arith.constant 0 : i32
    %397 = arith.addi %396, %c0_i32_60 : i32
    %398 = arith.index_cast %397 : i32 to index
    %399 = memref.load %arg3[%398] : memref<60xf32, #tpu.memory_space<smem>>
    %c1_i32_61 = arith.constant 1 : i32
    %400 = arith.addi %396, %c1_i32_61 : i32
    %401 = arith.index_cast %400 : i32 to index
    %402 = memref.load %arg3[%401] : memref<60xf32, #tpu.memory_space<smem>>
    %c2_i32_62 = arith.constant 2 : i32
    %403 = arith.addi %396, %c2_i32_62 : i32
    %404 = arith.index_cast %403 : i32 to index
    %405 = memref.load %arg3[%404] : memref<60xf32, #tpu.memory_space<smem>>
    %c3_i32_63 = arith.constant 3 : i32
    %406 = arith.addi %396, %c3_i32_63 : i32
    %407 = arith.index_cast %406 : i32 to index
    %408 = memref.load %arg3[%407] : memref<60xf32, #tpu.memory_space<smem>>
    %c4_i32_64 = arith.constant 4 : i32
    %409 = arith.addi %396, %c4_i32_64 : i32
    %410 = arith.index_cast %409 : i32 to index
    %411 = memref.load %arg3[%410] : memref<60xf32, #tpu.memory_space<smem>>
    %412 = vector.broadcast %408 : f32 to vector<8x128xf32>
    %413 = arith.mulf %388, %412 : vector<8x128xf32>
    %414 = vector.broadcast %399 : f32 to vector<8x128xf32>
    %415 = arith.mulf %394, %414 : vector<8x128xf32>
    %416 = arith.addf %413, %415 : vector<8x128xf32>
    %417 = vector.broadcast %411 : f32 to vector<8x128xf32>
    %418 = arith.mulf %391, %417 : vector<8x128xf32>
    %419 = vector.broadcast %402 : f32 to vector<8x128xf32>
    %420 = arith.mulf %394, %419 : vector<8x128xf32>
    %421 = arith.addf %418, %420 : vector<8x128xf32>
    %422 = vector.broadcast %405 : f32 to vector<8x128xf32>
    %423 = arith.mulf %394, %422 : vector<8x128xf32>
    %424 = arith.addf %416, %421 : vector<8x128xf32>
    %425 = arith.addf %424, %423 : vector<8x128xf32>
    %426 = tpu.reciprocal %425 {approx = true} : vector<8x128xf32> -> vector<8x128xf32>
    %427 = arith.mulf %425, %426 : vector<8x128xf32>
    %cst_65 = arith.constant 2.000000e+00 : f32
    %428 = vector.broadcast %cst_65 : f32 to vector<8x128xf32>
    %429 = arith.subf %428, %427 : vector<8x128xf32>
    %430 = arith.mulf %426, %429 : vector<8x128xf32>
    %431 = arith.mulf %416, %430 : vector<8x128xf32>
    %432 = arith.mulf %421, %430 : vector<8x128xf32>
    %433 = arith.mulf %423, %430 : vector<8x128xf32>
    %434 = vector.broadcast %399 : f32 to vector<8x128xf32>
    %435 = arith.select %395, %431, %434 : vector<8x128xi1>, vector<8x128xf32>
    %436 = arith.select %345, %435, %388 : vector<8x128xi1>, vector<8x128xf32>
    %437 = vector.broadcast %402 : f32 to vector<8x128xf32>
    %438 = arith.select %395, %432, %437 : vector<8x128xi1>, vector<8x128xf32>
    %439 = arith.select %345, %438, %391 : vector<8x128xi1>, vector<8x128xf32>
    %440 = vector.broadcast %405 : f32 to vector<8x128xf32>
    %441 = arith.select %395, %433, %440 : vector<8x128xi1>, vector<8x128xf32>
    %442 = arith.select %345, %441, %394 : vector<8x128xi1>, vector<8x128xf32>
    %443 = arith.ori %395, %345 : vector<8x128xi1>
    %c10_i32_66 = arith.constant 10 : i32
    %444 = arith.addi %348, %c10_i32_66 : i32
    %c0_i32_67 = arith.constant 0 : i32
    %445 = arith.addi %444, %c0_i32_67 : i32
    %446 = arith.index_cast %445 : i32 to index
    %447 = memref.load %arg3[%446] : memref<60xf32, #tpu.memory_space<smem>>
    %c1_i32_68 = arith.constant 1 : i32
    %448 = arith.addi %444, %c1_i32_68 : i32
    %449 = arith.index_cast %448 : i32 to index
    %450 = memref.load %arg3[%449] : memref<60xf32, #tpu.memory_space<smem>>
    %c2_i32_69 = arith.constant 2 : i32
    %451 = arith.addi %444, %c2_i32_69 : i32
    %452 = arith.index_cast %451 : i32 to index
    %453 = memref.load %arg3[%452] : memref<60xf32, #tpu.memory_space<smem>>
    %c3_i32_70 = arith.constant 3 : i32
    %454 = arith.addi %444, %c3_i32_70 : i32
    %455 = arith.index_cast %454 : i32 to index
    %456 = memref.load %arg3[%455] : memref<60xf32, #tpu.memory_space<smem>>
    %c4_i32_71 = arith.constant 4 : i32
    %457 = arith.addi %444, %c4_i32_71 : i32
    %458 = arith.index_cast %457 : i32 to index
    %459 = memref.load %arg3[%458] : memref<60xf32, #tpu.memory_space<smem>>
    %460 = vector.broadcast %456 : f32 to vector<8x128xf32>
    %461 = arith.mulf %436, %460 : vector<8x128xf32>
    %462 = vector.broadcast %447 : f32 to vector<8x128xf32>
    %463 = arith.mulf %442, %462 : vector<8x128xf32>
    %464 = arith.addf %461, %463 : vector<8x128xf32>
    %465 = vector.broadcast %459 : f32 to vector<8x128xf32>
    %466 = arith.mulf %439, %465 : vector<8x128xf32>
    %467 = vector.broadcast %450 : f32 to vector<8x128xf32>
    %468 = arith.mulf %442, %467 : vector<8x128xf32>
    %469 = arith.addf %466, %468 : vector<8x128xf32>
    %470 = vector.broadcast %453 : f32 to vector<8x128xf32>
    %471 = arith.mulf %442, %470 : vector<8x128xf32>
    %472 = arith.addf %464, %469 : vector<8x128xf32>
    %473 = arith.addf %472, %471 : vector<8x128xf32>
    %474 = tpu.reciprocal %473 {approx = true} : vector<8x128xf32> -> vector<8x128xf32>
    %475 = arith.mulf %473, %474 : vector<8x128xf32>
    %cst_72 = arith.constant 2.000000e+00 : f32
    %476 = vector.broadcast %cst_72 : f32 to vector<8x128xf32>
    %477 = arith.subf %476, %475 : vector<8x128xf32>
    %478 = arith.mulf %474, %477 : vector<8x128xf32>
    %479 = arith.mulf %464, %478 : vector<8x128xf32>
    %480 = arith.mulf %469, %478 : vector<8x128xf32>
    %481 = arith.mulf %471, %478 : vector<8x128xf32>
    %482 = vector.broadcast %447 : f32 to vector<8x128xf32>
    %483 = arith.select %443, %479, %482 : vector<8x128xi1>, vector<8x128xf32>
    %484 = arith.select %347, %483, %436 : vector<8x128xi1>, vector<8x128xf32>
    %485 = vector.broadcast %450 : f32 to vector<8x128xf32>
    %486 = arith.select %443, %480, %485 : vector<8x128xi1>, vector<8x128xf32>
    %487 = arith.select %347, %486, %439 : vector<8x128xi1>, vector<8x128xf32>
    %488 = vector.broadcast %453 : f32 to vector<8x128xf32>
    %489 = arith.select %443, %481, %488 : vector<8x128xi1>, vector<8x128xf32>
    %490 = arith.select %347, %489, %442 : vector<8x128xi1>, vector<8x128xf32>
    %491 = arith.ori %443, %347 : vector<8x128xi1>
    %c3_i32_73 = arith.constant 3 : i32
    %492 = arith.index_cast %c3_i32_73 : i32 to index
    %c0_74 = arith.constant 0 : index
    %c0_75 = arith.constant 0 : index
    %493 = vector.load %arg1[%492, %c0_74, %c0_75] : memref<4x8x128xf32, #tpu.memory_space<vmem>>, vector<1x8x128xf32>
    %494 = vector.shape_cast %493 : vector<1x8x128xf32> to vector<8x128xf32>
    %c2_i32_76 = arith.constant 2 : i32
    %495 = arith.muli %c2_i32_76, %c3_i32_73 : i32
    %496 = arith.index_cast %495 : i32 to index
    %497 = memref.load %arg2[%496] : memref<8xf32, #tpu.memory_space<smem>>
    %c2_i32_77 = arith.constant 2 : i32
    %498 = arith.muli %c2_i32_77, %c3_i32_73 : i32
    %c1_i32_78 = arith.constant 1 : i32
    %499 = arith.addi %498, %c1_i32_78 : i32
    %500 = arith.index_cast %499 : i32 to index
    %501 = memref.load %arg2[%500] : memref<8xf32, #tpu.memory_space<smem>>
    %502 = vector.broadcast %497 : f32 to vector<8x128xf32>
    %503 = arith.cmpf ole, %494, %502 : vector<8x128xf32>
    %504 = vector.broadcast %497 : f32 to vector<8x128xf32>
    %505 = arith.cmpf oge, %494, %504 : vector<8x128xf32>
    %506 = vector.broadcast %501 : f32 to vector<8x128xf32>
    %507 = arith.cmpf olt, %494, %506 : vector<8x128xf32>
    %508 = arith.andi %505, %507 : vector<8x128xi1>
    %509 = vector.broadcast %501 : f32 to vector<8x128xf32>
    %510 = arith.cmpf ogt, %494, %509 : vector<8x128xf32>
    %c15_i32_79 = arith.constant 15 : i32
    %511 = arith.muli %c15_i32_79, %c3_i32_73 : i32
    %c0_i32_80 = arith.constant 0 : i32
    %512 = arith.addi %511, %c0_i32_80 : i32
    %513 = arith.index_cast %512 : i32 to index
    %514 = memref.load %arg3[%513] : memref<60xf32, #tpu.memory_space<smem>>
    %c1_i32_81 = arith.constant 1 : i32
    %515 = arith.addi %511, %c1_i32_81 : i32
    %516 = arith.index_cast %515 : i32 to index
    %517 = memref.load %arg3[%516] : memref<60xf32, #tpu.memory_space<smem>>
    %c2_i32_82 = arith.constant 2 : i32
    %518 = arith.addi %511, %c2_i32_82 : i32
    %519 = arith.index_cast %518 : i32 to index
    %520 = memref.load %arg3[%519] : memref<60xf32, #tpu.memory_space<smem>>
    %c3_i32_83 = arith.constant 3 : i32
    %521 = arith.addi %511, %c3_i32_83 : i32
    %522 = arith.index_cast %521 : i32 to index
    %523 = memref.load %arg3[%522] : memref<60xf32, #tpu.memory_space<smem>>
    %c4_i32_84 = arith.constant 4 : i32
    %524 = arith.addi %511, %c4_i32_84 : i32
    %525 = arith.index_cast %524 : i32 to index
    %526 = memref.load %arg3[%525] : memref<60xf32, #tpu.memory_space<smem>>
    %527 = vector.broadcast %523 : f32 to vector<8x128xf32>
    %528 = arith.mulf %484, %527 : vector<8x128xf32>
    %529 = vector.broadcast %514 : f32 to vector<8x128xf32>
    %530 = arith.mulf %490, %529 : vector<8x128xf32>
    %531 = arith.addf %528, %530 : vector<8x128xf32>
    %532 = vector.broadcast %526 : f32 to vector<8x128xf32>
    %533 = arith.mulf %487, %532 : vector<8x128xf32>
    %534 = vector.broadcast %517 : f32 to vector<8x128xf32>
    %535 = arith.mulf %490, %534 : vector<8x128xf32>
    %536 = arith.addf %533, %535 : vector<8x128xf32>
    %537 = vector.broadcast %520 : f32 to vector<8x128xf32>
    %538 = arith.mulf %490, %537 : vector<8x128xf32>
    %539 = arith.addf %531, %536 : vector<8x128xf32>
    %540 = arith.addf %539, %538 : vector<8x128xf32>
    %541 = tpu.reciprocal %540 {approx = true} : vector<8x128xf32> -> vector<8x128xf32>
    %542 = arith.mulf %540, %541 : vector<8x128xf32>
    %cst_85 = arith.constant 2.000000e+00 : f32
    %543 = vector.broadcast %cst_85 : f32 to vector<8x128xf32>
    %544 = arith.subf %543, %542 : vector<8x128xf32>
    %545 = arith.mulf %541, %544 : vector<8x128xf32>
    %546 = arith.mulf %531, %545 : vector<8x128xf32>
    %547 = arith.mulf %536, %545 : vector<8x128xf32>
    %548 = arith.mulf %538, %545 : vector<8x128xf32>
    %549 = vector.broadcast %514 : f32 to vector<8x128xf32>
    %550 = arith.select %491, %546, %549 : vector<8x128xi1>, vector<8x128xf32>
    %551 = arith.select %503, %550, %484 : vector<8x128xi1>, vector<8x128xf32>
    %552 = vector.broadcast %517 : f32 to vector<8x128xf32>
    %553 = arith.select %491, %547, %552 : vector<8x128xi1>, vector<8x128xf32>
    %554 = arith.select %503, %553, %487 : vector<8x128xi1>, vector<8x128xf32>
    %555 = vector.broadcast %520 : f32 to vector<8x128xf32>
    %556 = arith.select %491, %548, %555 : vector<8x128xi1>, vector<8x128xf32>
    %557 = arith.select %503, %556, %490 : vector<8x128xi1>, vector<8x128xf32>
    %558 = arith.ori %491, %503 : vector<8x128xi1>
    %c5_i32_86 = arith.constant 5 : i32
    %559 = arith.addi %511, %c5_i32_86 : i32
    %c0_i32_87 = arith.constant 0 : i32
    %560 = arith.addi %559, %c0_i32_87 : i32
    %561 = arith.index_cast %560 : i32 to index
    %562 = memref.load %arg3[%561] : memref<60xf32, #tpu.memory_space<smem>>
    %c1_i32_88 = arith.constant 1 : i32
    %563 = arith.addi %559, %c1_i32_88 : i32
    %564 = arith.index_cast %563 : i32 to index
    %565 = memref.load %arg3[%564] : memref<60xf32, #tpu.memory_space<smem>>
    %c2_i32_89 = arith.constant 2 : i32
    %566 = arith.addi %559, %c2_i32_89 : i32
    %567 = arith.index_cast %566 : i32 to index
    %568 = memref.load %arg3[%567] : memref<60xf32, #tpu.memory_space<smem>>
    %c3_i32_90 = arith.constant 3 : i32
    %569 = arith.addi %559, %c3_i32_90 : i32
    %570 = arith.index_cast %569 : i32 to index
    %571 = memref.load %arg3[%570] : memref<60xf32, #tpu.memory_space<smem>>
    %c4_i32_91 = arith.constant 4 : i32
    %572 = arith.addi %559, %c4_i32_91 : i32
    %573 = arith.index_cast %572 : i32 to index
    %574 = memref.load %arg3[%573] : memref<60xf32, #tpu.memory_space<smem>>
    %575 = vector.broadcast %571 : f32 to vector<8x128xf32>
    %576 = arith.mulf %551, %575 : vector<8x128xf32>
    %577 = vector.broadcast %562 : f32 to vector<8x128xf32>
    %578 = arith.mulf %557, %577 : vector<8x128xf32>
    %579 = arith.addf %576, %578 : vector<8x128xf32>
    %580 = vector.broadcast %574 : f32 to vector<8x128xf32>
    %581 = arith.mulf %554, %580 : vector<8x128xf32>
    %582 = vector.broadcast %565 : f32 to vector<8x128xf32>
    %583 = arith.mulf %557, %582 : vector<8x128xf32>
    %584 = arith.addf %581, %583 : vector<8x128xf32>
    %585 = vector.broadcast %568 : f32 to vector<8x128xf32>
    %586 = arith.mulf %557, %585 : vector<8x128xf32>
    %587 = arith.addf %579, %584 : vector<8x128xf32>
    %588 = arith.addf %587, %586 : vector<8x128xf32>
    %589 = tpu.reciprocal %588 {approx = true} : vector<8x128xf32> -> vector<8x128xf32>
    %590 = arith.mulf %588, %589 : vector<8x128xf32>
    %cst_92 = arith.constant 2.000000e+00 : f32
    %591 = vector.broadcast %cst_92 : f32 to vector<8x128xf32>
    %592 = arith.subf %591, %590 : vector<8x128xf32>
    %593 = arith.mulf %589, %592 : vector<8x128xf32>
    %594 = arith.mulf %579, %593 : vector<8x128xf32>
    %595 = arith.mulf %584, %593 : vector<8x128xf32>
    %596 = arith.mulf %586, %593 : vector<8x128xf32>
    %597 = vector.broadcast %562 : f32 to vector<8x128xf32>
    %598 = arith.select %558, %594, %597 : vector<8x128xi1>, vector<8x128xf32>
    %599 = arith.select %508, %598, %551 : vector<8x128xi1>, vector<8x128xf32>
    %600 = vector.broadcast %565 : f32 to vector<8x128xf32>
    %601 = arith.select %558, %595, %600 : vector<8x128xi1>, vector<8x128xf32>
    %602 = arith.select %508, %601, %554 : vector<8x128xi1>, vector<8x128xf32>
    %603 = vector.broadcast %568 : f32 to vector<8x128xf32>
    %604 = arith.select %558, %596, %603 : vector<8x128xi1>, vector<8x128xf32>
    %605 = arith.select %508, %604, %557 : vector<8x128xi1>, vector<8x128xf32>
    %606 = arith.ori %558, %508 : vector<8x128xi1>
    %c10_i32_93 = arith.constant 10 : i32
    %607 = arith.addi %511, %c10_i32_93 : i32
    %c0_i32_94 = arith.constant 0 : i32
    %608 = arith.addi %607, %c0_i32_94 : i32
    %609 = arith.index_cast %608 : i32 to index
    %610 = memref.load %arg3[%609] : memref<60xf32, #tpu.memory_space<smem>>
    %c1_i32_95 = arith.constant 1 : i32
    %611 = arith.addi %607, %c1_i32_95 : i32
    %612 = arith.index_cast %611 : i32 to index
    %613 = memref.load %arg3[%612] : memref<60xf32, #tpu.memory_space<smem>>
    %c2_i32_96 = arith.constant 2 : i32
    %614 = arith.addi %607, %c2_i32_96 : i32
    %615 = arith.index_cast %614 : i32 to index
    %616 = memref.load %arg3[%615] : memref<60xf32, #tpu.memory_space<smem>>
    %c3_i32_97 = arith.constant 3 : i32
    %617 = arith.addi %607, %c3_i32_97 : i32
    %618 = arith.index_cast %617 : i32 to index
    %619 = memref.load %arg3[%618] : memref<60xf32, #tpu.memory_space<smem>>
    %c4_i32_98 = arith.constant 4 : i32
    %620 = arith.addi %607, %c4_i32_98 : i32
    %621 = arith.index_cast %620 : i32 to index
    %622 = memref.load %arg3[%621] : memref<60xf32, #tpu.memory_space<smem>>
    %623 = vector.broadcast %619 : f32 to vector<8x128xf32>
    %624 = arith.mulf %599, %623 : vector<8x128xf32>
    %625 = vector.broadcast %610 : f32 to vector<8x128xf32>
    %626 = arith.mulf %605, %625 : vector<8x128xf32>
    %627 = arith.addf %624, %626 : vector<8x128xf32>
    %628 = vector.broadcast %622 : f32 to vector<8x128xf32>
    %629 = arith.mulf %602, %628 : vector<8x128xf32>
    %630 = vector.broadcast %613 : f32 to vector<8x128xf32>
    %631 = arith.mulf %605, %630 : vector<8x128xf32>
    %632 = arith.addf %629, %631 : vector<8x128xf32>
    %633 = vector.broadcast %616 : f32 to vector<8x128xf32>
    %634 = arith.mulf %605, %633 : vector<8x128xf32>
    %635 = arith.addf %627, %632 : vector<8x128xf32>
    %636 = arith.addf %635, %634 : vector<8x128xf32>
    %637 = tpu.reciprocal %636 {approx = true} : vector<8x128xf32> -> vector<8x128xf32>
    %638 = arith.mulf %636, %637 : vector<8x128xf32>
    %cst_99 = arith.constant 2.000000e+00 : f32
    %639 = vector.broadcast %cst_99 : f32 to vector<8x128xf32>
    %640 = arith.subf %639, %638 : vector<8x128xf32>
    %641 = arith.mulf %637, %640 : vector<8x128xf32>
    %642 = arith.mulf %627, %641 : vector<8x128xf32>
    %643 = arith.mulf %632, %641 : vector<8x128xf32>
    %644 = arith.mulf %634, %641 : vector<8x128xf32>
    %645 = vector.broadcast %610 : f32 to vector<8x128xf32>
    %646 = arith.select %606, %642, %645 : vector<8x128xi1>, vector<8x128xf32>
    %647 = arith.select %510, %646, %599 : vector<8x128xi1>, vector<8x128xf32>
    %648 = vector.broadcast %613 : f32 to vector<8x128xf32>
    %649 = arith.select %606, %643, %648 : vector<8x128xi1>, vector<8x128xf32>
    %650 = arith.select %510, %649, %602 : vector<8x128xi1>, vector<8x128xf32>
    %651 = vector.broadcast %616 : f32 to vector<8x128xf32>
    %652 = arith.select %606, %644, %651 : vector<8x128xi1>, vector<8x128xf32>
    %653 = arith.select %510, %652, %605 : vector<8x128xi1>, vector<8x128xf32>
    %654 = arith.ori %606, %510 : vector<8x128xi1>
    %c4_i32_100 = arith.constant 4 : i32
    %655 = arith.subf %650, %647 : vector<8x128xf32>
    %656 = math.exp %655 : vector<8x128xf32>
    %cst_101 = arith.constant 1.000000e+00 : f32
    %657 = vector.broadcast %cst_101 : f32 to vector<8x128xf32>
    %658 = arith.addf %657, %656 : vector<8x128xf32>
    %659 = tpu.reciprocal %658 {approx = true} : vector<8x128xf32> -> vector<8x128xf32>
    %660 = arith.mulf %658, %659 : vector<8x128xf32>
    %cst_102 = arith.constant 2.000000e+00 : f32
    %661 = vector.broadcast %cst_102 : f32 to vector<8x128xf32>
    %662 = arith.subf %661, %660 : vector<8x128xf32>
    %663 = arith.mulf %659, %662 : vector<8x128xf32>
    %664 = vector.shape_cast %663 : vector<8x128xf32> to vector<1x8x128xf32>
    %c0_103 = arith.constant 0 : index
    %c0_104 = arith.constant 0 : index
    %c0_105 = arith.constant 0 : index
    %665 = vector.load %arg4[%c0_103, %c0_104, %c0_105] : memref<2x8x128xf32, #tpu.memory_space<vmem>>, vector<1x8x128xf32>
    tpu.vector_store %arg4[%c0_103, %c0_104, %c0_105], %664 {strides = array<i32>} : memref<2x8x128xf32, #tpu.memory_space<vmem>>, vector<1x8x128xf32>,
    %666 = arith.mulf %656, %663 : vector<8x128xf32>
    %667 = vector.shape_cast %666 : vector<8x128xf32> to vector<1x8x128xf32>
    %c1 = arith.constant 1 : index
    %c0_106 = arith.constant 0 : index
    %c0_107 = arith.constant 0 : index
    %668 = vector.load %arg4[%c1, %c0_106, %c0_107] : memref<2x8x128xf32, #tpu.memory_space<vmem>>, vector<1x8x128xf32>
    tpu.vector_store %arg4[%c1, %c0_106, %c0_107], %667 {strides = array<i32>} : memref<2x8x128xf32, #tpu.memory_space<vmem>>, vector<1x8x128xf32>,
    return
  }
  func.func @transform_0(%arg0: i32) -> (i32, i32, i32) {
    %c0_i32 = arith.constant 0 : i32
    %c0_i32_0 = arith.constant 0 : i32
    %c0_i32_1 = arith.constant 0 : i32
    return %c0_i32, %arg0, %c0_i32_0 : i32, i32, i32
  }
  func.func @transform_1(%arg0: i32) -> i32 {
    %c0_i32 = arith.constant 0 : i32
    %c0_i32_0 = arith.constant 0 : i32
    return %c0_i32 : i32
  }
  func.func @transform_2(%arg0: i32) -> i32 {
    %c0_i32 = arith.constant 0 : i32
    %c0_i32_0 = arith.constant 0 : i32
    return %c0_i32 : i32
  }
  func.func @transform_3(%arg0: i32) -> (i32, i32, i32) {
    %c0_i32 = arith.constant 0 : i32
    %c0_i32_0 = arith.constant 0 : i32
    %c0_i32_1 = arith.constant 0 : i32
    return %c0_i32, %arg0, %c0_i32_0 : i32, i32, i32
  }
}

</mosaic_0001>

<bundles_post_ra>
// kernel: tpu_custom_call.1
= control target key start
LH: loop header
LB: loop body
LE: loop exit
PB: predicated region body
PF: predicated region fallthrough
CT: control target
= control target key end

     0   :  { %8 = vsyncpa [#allocation3], 0  ;;  %s1110_s0 = inlined_call_operand.hbm [shape: f32[4,8,128], index: 0, kind: input, shape index: {}]   ;;  %s1111_s1 = inlined_call_operand.hbm [shape: f32[8], index: 1, kind: input, shape index: {}]   ;;  %s1112_s2 = inlined_call_operand.vmem [shape: f32[60], index: 2, kind: input, shape index: {}]   ;;  %s1113_s3 = inlined_call_operand.hbm [shape: f32[2,8,128], index: 3, kind: output, shape index: {}]  }
   0x1   :  { %9 = vsyncpa [#allocation5], 0 }
   0x2   :  { %10 = vsyncpa [#allocation6], 0 }
   0x3   :  { %11 = vsyncpa [#allocation4], 0  ;;  %s16_s14 = sshll.u32 %s1110_s0, 4  ;;  %s676_s15 = smov [#allocation2]   ;;  %s17_s14 = int_to_ptr.hbm [resolvable:$true] %s16_s14 }
   0x4   :  { %s18_s16 = sshll.u32 %s676_s15, 4  ;;  %s30_s19 = sshll.u32 %s1111_s1, 4  ;;  %s19_s16 = int_to_ptr.vmem [resolvable:$true] %s18_s16  ;;  %s31_s19 = int_to_ptr.hbm [resolvable:$true] %s30_s19 }
   0x5   :  { %s677_s20 = smov 128   ;;  %s678_s21 = smov 8  }
   0x6   :  { %24 = dma.hbm_to_vmem [thread:$0]  %s17_s14, 512, %s19_s16, [#allocation3], %s677_s20, %s677_s20, %s678_s21  }
   0x7   :  { %s679_s22 = smov [#allocation7]   ;;  %s39_s0 = sshll.u32 %s1112_s2, 4  ;;  %s40_s0 = int_to_ptr.vmem [resolvable:$true] %s39_s0 }
   0x8   :  { %33 = dma.hbm_to_smem %s31_s19, 16, %s679_s22, [#allocation5]  }
   0x9   :  { %s680_s25 = smov [#allocation8]  }
   0xa   :  { %42 = dma.vmem_to_smem %s40_s0, 16, %s680_s25, [#allocation6]  }
   0xb   :  { %668 = dma.done.wait [#allocation3], 512  }
   0xc   :  { %669 = vsyncadd [#allocation3], 4294966784 }
   0xd   :  { %670 = dma.done.wait [#allocation5], 16  }
   0xe   :  { %671 = vsyncadd [#allocation5], 4294967280 }
   0xf   :  { %672 = dma.done.wait [#allocation6], 16  }
  0x10   :  { %673 = vsyncadd [#allocation6], 4294967280 }
  0x11   :  { %55 = sfence }
  0x12   :  { %s714_s1 = sld [smem:[#allocation7]]  ;;  %v716_v0 = vld [vmem:[#allocation2] sm:$0xff] }
  0x13   :  { %s66_s26 = sld [smem:[#allocation8]] }
  0x14   :  { %s501_s27 = sld [smem:[#allocation8 + $0x1]] }
  0x15   :  { %s502_s28 = sld [smem:[#allocation8 + $0x2]] }
  0x16   :  { %s718_s29 = sld [smem:[#allocation8 + $0x5]] }
  0x17   :  { %s721_s2 = sld [smem:[#allocation8 + $0x6]] }
  0x18   :  { %v59_v1 = vstv %s714_s1  ;;  %s723_s30 = sld [smem:[#allocation8 + $0x7]] }
  0x19   :  { %vm726_vm0 = vcmp.le.f32.partialorder %v716_v0, %v59_v1  ;;  %s506_s4 = sld [smem:[#allocation8 + $0x8]]  ;;  %v69_v3 = vstv %s66_s26  ;;  %vm61_vm1 = vcmp.ge.f32.partialorder %v716_v0, %v59_v1 }
  0x1a   :  { %s507_s5 = sld [smem:[#allocation8 + $0x9]]  ;;  %v71_v4 = vstv %s501_s27  ;;  %v70_v8 = vsel %vm726_vm0, %v69_v3, 0.0 }
  0x1b   :  { %v73_v5 = vstv %s502_s28  ;;  %v72_v10 = vsel %vm726_vm0, %v71_v4, 0.0  ;;  %s739_s6 = sld [smem:[#allocation7 + $0x1]] }
  0x1c   :  { %v74_v6 = vsel %vm726_vm0, %v73_v5, 1.0  ;;  %v82_v7 = vstv %s718_s29  ;;  %s741_s7 = sld [smem:[#allocation8 + $0xa]] }
  0x1d   :  { %v87_v9 = vstv %s721_s2  ;;  %v83_v11 = vmul.f32 %v82_v7, %v74_v6  ;;  %s743_s8 = sld [smem:[#allocation8 + $0xb]] }
  0x1e   :  { %v88_v13 = vmul.f32 %v87_v9, %v74_v6  ;;  %v90_v16 = vstv %s723_s30  ;;  %s511_s9 = sld [smem:[#allocation8 + $0xd]] }
  0x1f   :  { %v80_v12 = vstv %s506_s4  ;;  %v91_v20 = vmul.f32 %v90_v16, %v74_v6  ;;  %s512_s10 = sld [smem:[#allocation8 + $0xe]] }
  0x20   :  { %v81_v14 = vmul.f32 %v80_v12, %v70_v8  ;;  %v85_v15 = vstv %s507_s5  ;;  %s746_s11 = sld [smem:[#allocation8 + $0xc]] }
  0x21   :  { %v86_v17 = vmul.f32 %v85_v15, %v72_v10  ;;  %v62_v24 = vstv %s739_s6  ;;  %s769_s12 = sld [smem:[#allocation8 + $0xf]] }
  0x22   :  { %v84_v18 = vadd.f32 %v83_v11, %v81_v14  ;;  %vm63_vm2 = vcmp.lt.f32.partialorder %v716_v0, %v62_v24  ;;  %v115_v33 = vstv %s741_s7  ;;  %s771_s13 = sld [smem:[#allocation8 + $0x10]]  ;;  %vm784_vm5 = vcmp.gt.f32.partialorder %v716_v0, %v62_v24 }
  0x23   :  { %v89_v19 = vadd.f32 %v88_v13, %v86_v17  ;;  %vm750_vm3 = vmand %vm61_vm1, %vm63_vm2  ;;  %v120_v35 = vstv %s743_s8  ;;  %s518_s14 = sld [smem:[#allocation8 + $0x12]] }
  0x24   :  { %v113_v32 = vstv %s511_s9  ;;  %s519_s15 = sld [smem:[#allocation8 + $0x13]]  ;;  %vm779_vm4 = vmor %vm726_vm0, %vm750_vm3 }
  0x25   :  { %v92_v21 = vadd.f32 %v89_v19, %v84_v18  ;;  %v118_v34 = vstv %s512_s10  ;;  %s773_s16 = sld [smem:[#allocation8 + $0x11]]  ;;  %vm818_vm6 = vmor %vm779_vm4, %vm784_vm5 }
  0x26   :  { %v123_v42 = vstv %s746_s11  ;;  %s803_s17 = sld [smem:[#allocation7 + $0x2]] }
  0x27   :  { %v93_v22 = vadd.f32 %v92_v21, %v91_v20  ;;  %v159_v62 = vstv %s769_s12  ;;  %s805_s18 = sld [smem:[#allocation8 + $0x14]] }
  0x28   :  { %v164_v1 = vstv %s771_s13  ;;  %s807_s19 = sld [smem:[#allocation8 + $0x15]] }
  0x29   :  { %570 = vrcp.f32 %v93_v22  ;;  %v157_v61 = vstv %s518_s14  ;;  %s523_s22 = sld [smem:[#allocation8 + $0x17]] }
  0x2a   :  { %v162_v63 = vstv %s519_s15  ;;  %s524_s23 = sld [smem:[#allocation8 + $0x18]] }
  0x2b   :  { %s809_s24 = sld [smem:[#allocation8 + $0x16]] }
  0x2c   :  { %v145_v21 = vstv %s803_s17  ;;  %s842_s0 = sld [smem:[#allocation7 + $0x3]] }
  0x2d   :  { %s844_s25 = sld [smem:[#allocation8 + $0x19]] }
  0x2e   :  { %s846_s1 = sld [smem:[#allocation8 + $0x1a]] }
  0x2f   :  { %v571_v23 = vpop.eup %570  ;;  %v190_v28 = vstv %s523_s22  ;;  %s528_s26 = sld [smem:[#allocation8 + $0x1c]] }
  0x30   :  { %v95_v25 = vmul.f32 %v571_v23, %v93_v22  ;;  %s529_s27 = sld [smem:[#allocation8 + $0x1d]] }
  0x31   :  { %s849_s28 = sld [smem:[#allocation8 + $0x1b]] }
  0x32   :  { %v96_v26 = vsub.f32 2.0, %v95_v25  ;;  %s880_s29 = sld [smem:[#allocation8 + $0x1e]] }
  0x33   :  { %s882_s2 = sld [smem:[#allocation8 + $0x1f]] }
  0x34   :  { %v97_v27 = vmul.f32 %v571_v23, %v96_v26  ;;  %s535_s30 = sld [smem:[#allocation8 + $0x21]] }
  0x35   :  { %s536_s4 = sld [smem:[#allocation8 + $0x22]] }
  0x36   :  { %v98_v29 = vmul.f32 %v97_v27, %v84_v18  ;;  %v99_v30 = vmul.f32 %v97_v27, %v89_v19  ;;  %v100_v31 = vmul.f32 %v97_v27, %v91_v20  ;;  %v811_v20 = vld [vmem:[#allocation2 + $0x8] sm:$0xff]  ;;  %s884_s5 = sld [smem:[#allocation8 + $0x20]] }
  0x37   :  { %vm823_vm7 = vcmp.le.f32.partialorder %v811_v20, %v145_v21  ;;  %vm147_vm8 = vcmp.ge.f32.partialorder %v811_v20, %v145_v21  ;;  %s914_s6 = sld [smem:[#allocation7 + $0x4]] }
  0x38   :  { %v101_v36 = vsel %vm726_vm0, %v98_v29, %v82_v7  ;;  %v103_v37 = vsel %vm726_vm0, %v99_v30, %v87_v9  ;;  %v105_v38 = vsel %vm726_vm0, %v100_v31, %v90_v16  ;;  %v167_v7 = vstv %s773_s16  ;;  %vm857_vm10 = vmor %vm818_vm6, %vm823_vm7  ;;  %s916_s7 = sld [smem:[#allocation8 + $0x23]] }
  0x39   :  { %v102_v39 = vsel %vm750_vm3, %v101_v36, %v70_v8  ;;  %v104_v40 = vsel %vm750_vm3, %v103_v37, %v72_v10  ;;  %v106_v41 = vsel %vm750_vm3, %v105_v38, %v74_v6  ;;  %v192_v29 = vstv %s805_s18  ;;  %s918_s8 = sld [smem:[#allocation8 + $0x24]] }
  0x3a   :  { %v114_v43 = vmul.f32 %v113_v32, %v102_v39  ;;  %v116_v44 = vmul.f32 %v115_v33, %v106_v41  ;;  %v119_v45 = vmul.f32 %v118_v34, %v104_v40  ;;  %v121_v46 = vmul.f32 %v120_v35, %v106_v41  ;;  %s540_s9 = sld [smem:[#allocation8 + $0x26]] }
  0x3b   :  { %v124_v49 = vmul.f32 %v123_v42, %v106_v41  ;;  %v195_v30 = vstv %s524_s23  ;;  %v197_v31 = vstv %s807_s19  ;;  %v200_v38 = vstv %s809_s24  ;;  %s541_s10 = sld [smem:[#allocation8 + $0x27]] }
  0x3c   :  { %v117_v47 = vadd.f32 %v116_v44, %v114_v43  ;;  %v122_v48 = vadd.f32 %v121_v46, %v119_v45  ;;  %v267_v24 = vstv %s535_s30  ;;  %s920_s11 = sld [smem:[#allocation8 + $0x25]] }
  0x3d   :  { %s953_s12 = sld [smem:[#allocation7 + $0x5]] }
  0x3e   :  { %v125_v50 = vadd.f32 %v122_v48, %v117_v47  ;;  %s955_s13 = sld [smem:[#allocation8 + $0x28]] }
  0x3f   :  { %s957_s14 = sld [smem:[#allocation8 + $0x29]] }
  0x40   :  { %v126_v51 = vadd.f32 %v125_v50, %v124_v49  ;;  %s545_s15 = sld [smem:[#allocation8 + $0x2b]] }
  0x41   :  { %s546_s16 = sld [smem:[#allocation8 + $0x2c]] }
  0x42   :  { %572 = vrcp.f32 %v126_v51  ;;  %s960_s17 = sld [smem:[#allocation8 + $0x2a]] }
  0x43   :  { %s991_s18 = sld [smem:[#allocation8 + $0x2d]] }
  0x44   :  { %s993_s19 = sld [smem:[#allocation8 + $0x2e]] }
  0x45   :  { %s552_s22 = sld [smem:[#allocation8 + $0x30]] }
  0x46   :  { %s553_s23 = sld [smem:[#allocation8 + $0x31]] }
  0x47   :  { %s995_s24 = sld [smem:[#allocation8 + $0x2f]] }
  0x48   :  { %v573_v52 = vpop.eup %572  ;;  %s1068_s30 = sld [smem:[#allocation8 + $0x38]] }
  0x49   :  { %v128_v53 = vmul.f32 %v573_v52, %v126_v51 }
  0x4b   :  { %v129_v54 = vsub.f32 2.0, %v128_v53 }
  0x4d   :  { %v130_v55 = vmul.f32 %v573_v52, %v129_v54  ;;  %v300_v54 = vstv %s540_s9 }
  0x4f   :  { %v131_v58 = vmul.f32 %v130_v55, %v117_v47  ;;  %v132_v59 = vmul.f32 %v130_v55, %v122_v48  ;;  %v133_v60 = vmul.f32 %v130_v55, %v124_v49  ;;  %v148_v49 = vstv %s842_s0  ;;  %s1025_s0 = sld [smem:[#allocation7 + $0x6]] }
  0x50   :  { %vm149_vm9 = vcmp.lt.f32.partialorder %v811_v20, %v148_v49  ;;  %vm895_vm13 = vcmp.gt.f32.partialorder %v811_v20, %v148_v49 }
  0x51   :  { %v134_v2 = vsel %vm779_vm4, %v131_v58, %v115_v33  ;;  %v136_v3 = vsel %vm779_vm4, %v132_v59, %v120_v35  ;;  %v138_v4 = vsel %vm779_vm4, %v133_v60, %v123_v42  ;;  %vm861_vm11 = vmand %vm147_vm8, %vm149_vm9  ;;  %v223_v58 = vstv %s528_s26  ;;  %s557_s26 = sld [smem:[#allocation8 + $0x35]] }
  0x52   :  { %v135_v0 = vsel %vm784_vm5, %v134_v2, %v102_v39  ;;  %v137_v5 = vsel %vm784_vm5, %v136_v3, %v104_v40  ;;  %v139_v6 = vsel %vm784_vm5, %v138_v4, %v106_v41  ;;  %v225_v59 = vstv %s844_s25  ;;  %vm890_vm12 = vmor %vm857_vm10, %vm861_vm11  ;;  %s1027_s25 = sld [smem:[#allocation8 + $0x32]] }
  0x53   :  { %v158_v8 = vmul.f32 %v157_v61, %v135_v0  ;;  %v160_v9 = vmul.f32 %v159_v62, %v139_v6  ;;  %v163_v10 = vmul.f32 %v162_v63, %v137_v5  ;;  %v165_v11 = vmul.f32 %v164_v1, %v139_v6  ;;  %vm929_vm14 = vmor %vm890_vm12, %vm895_vm13 }
  0x54   :  { %v168_v14 = vmul.f32 %v167_v7, %v139_v6  ;;  %v228_v60 = vstv %s529_s27  ;;  %v230_v61 = vstv %s846_s1  ;;  %s1029_s1 = sld [smem:[#allocation8 + $0x33]] }
  0x55   :  { %v161_v12 = vadd.f32 %v160_v9, %v158_v8  ;;  %v166_v13 = vadd.f32 %v165_v11, %v163_v10  ;;  %s558_s27 = sld [smem:[#allocation8 + $0x36]] }
  0x57   :  { %v169_v15 = vadd.f32 %v166_v13, %v161_v12 }
  0x59   :  { %v170_v16 = vadd.f32 %v169_v15, %v168_v14 }
  0x5b   :  { %574 = vrcp.f32 %v170_v16 }
  0x61   :  { %v575_v17 = vpop.eup %574 }
  0x62   :  { %v172_v18 = vmul.f32 %v575_v17, %v170_v16 }
  0x64   :  { %v173_v19 = vsub.f32 2.0, %v172_v18 }
  0x66   :  { %v174_v22 = vmul.f32 %v575_v17, %v173_v19 }
  0x68   :  { %v175_v25 = vmul.f32 %v174_v22, %v161_v12  ;;  %v176_v26 = vmul.f32 %v174_v22, %v166_v13  ;;  %v177_v27 = vmul.f32 %v174_v22, %v168_v14 }
  0x6a   :  { %v178_v32 = vsel %vm818_vm6, %v175_v25, %v159_v62  ;;  %v180_v33 = vsel %vm818_vm6, %v176_v26, %v164_v1  ;;  %v182_v34 = vsel %vm818_vm6, %v177_v27, %v167_v7  ;;  %v269_v25 = vstv %s880_s29  ;;  %s1064_s29 = sld [smem:[#allocation7 + $0x7]] }
  0x6b   :  { %v179_v35 = vsel %vm823_vm7, %v178_v32, %v135_v0  ;;  %v181_v36 = vsel %vm823_vm7, %v180_v33, %v137_v5  ;;  %v183_v37 = vsel %vm823_vm7, %v182_v34, %v139_v6  ;;  %v233_v0 = vstv %s849_s28  ;;  %s1031_s28 = sld [smem:[#allocation8 + $0x34]] }
  0x6c   :  { %v191_v39 = vmul.f32 %v190_v28, %v179_v35  ;;  %v193_v40 = vmul.f32 %v192_v29, %v183_v37  ;;  %v196_v41 = vmul.f32 %v195_v30, %v181_v36  ;;  %v198_v42 = vmul.f32 %v197_v31, %v183_v37 }
  0x6d   :  { %v201_v45 = vmul.f32 %v200_v38, %v183_v37  ;;  %v272_v26 = vstv %s536_s4  ;;  %v274_v27 = vstv %s882_s2  ;;  %v277_v33 = vstv %s884_s5  ;;  %s1066_s2 = sld [smem:[#allocation8 + $0x37]] }
  0x6e   :  { %v194_v43 = vadd.f32 %v193_v40, %v191_v39  ;;  %v199_v44 = vadd.f32 %v198_v42, %v196_v41  ;;  %s562_s4 = sld [smem:[#allocation8 + $0x3a]] }
  0x6f   :  { %s563_s5 = sld [smem:[#allocation8 + $0x3b]] }
  0x70   :  { %v202_v46 = vadd.f32 %v199_v44, %v194_v43 }
  0x72   :  { %v203_v47 = vadd.f32 %v202_v46, %v201_v45  ;;  %v922_v46 = vld [vmem:[#allocation2 + $0x10] sm:$0xff] }
  0x74   :  { %576 = vrcp.f32 %v203_v47 }
  0x7a   :  { %v577_v48 = vpop.eup %576 }
  0x7b   :  { %v205_v50 = vmul.f32 %v577_v48, %v203_v47  ;;  %v255_v47 = vstv %s914_s6  ;;  %s561_s6 = sld [smem:[#allocation8 + $0x39]] }
  0x7c   :  { %vm934_vm15 = vcmp.le.f32.partialorder %v922_v46, %v255_v47  ;;  %vm257_vm0 = vcmp.ge.f32.partialorder %v922_v46, %v255_v47 }
  0x7d   :  { %v206_v51 = vsub.f32 2.0, %v205_v50  ;;  %vm968_vm2 = vmor %vm929_vm14, %vm934_vm15  ;;  %v377_v50 = vstv %s552_s22 }
  0x7f   :  { %v207_v52 = vmul.f32 %v577_v48, %v206_v51 }
  0x81   :  { %v208_v55 = vmul.f32 %v207_v52, %v194_v43  ;;  %v209_v56 = vmul.f32 %v207_v52, %v199_v44  ;;  %v210_v57 = vmul.f32 %v207_v52, %v201_v45 }
  0x83   :  { %v211_v62 = vsel %vm857_vm10, %v208_v55, %v192_v29  ;;  %v213_v63 = vsel %vm857_vm10, %v209_v56, %v197_v31  ;;  %v215_v1 = vsel %vm857_vm10, %v210_v57, %v200_v38  ;;  %v302_v55 = vstv %s916_s7  ;;  %s681_s7 = smov [#allocation9]  }
  0x84   :  { %v212_v2 = vsel %vm861_vm11, %v211_v62, %v179_v35  ;;  %v214_v3 = vsel %vm861_vm11, %v213_v63, %v181_v36  ;;  %v216_v4 = vsel %vm861_vm11, %v215_v1, %v183_v37  ;;  %v305_v56 = vstv %s541_s10 }
  0x85   :  { %v224_v5 = vmul.f32 %v223_v58, %v212_v2  ;;  %v226_v6 = vmul.f32 %v225_v59, %v216_v4  ;;  %v229_v7 = vmul.f32 %v228_v60, %v214_v3  ;;  %v231_v8 = vmul.f32 %v230_v61, %v216_v4 }
  0x86   :  { %v234_v11 = vmul.f32 %v233_v0, %v216_v4  ;;  %v307_v57 = vstv %s918_s8  ;;  %v310_v1 = vstv %s920_s11  ;;  %s483_s8 = sshll.u32 %s681_s7, 4  ;;  %s485_s11 = sshll.u32 %s1113_s3, 4  ;;  %s484_s8 = int_to_ptr.vmem [resolvable:$true] %s483_s8  ;;  %s486_s11 = int_to_ptr.hbm [resolvable:$true] %s485_s11 }
  0x87   :  { %v227_v9 = vadd.f32 %v226_v6, %v224_v5  ;;  %v232_v10 = vadd.f32 %v231_v8, %v229_v7 }
  0x89   :  { %v235_v12 = vadd.f32 %v232_v10, %v227_v9 }
  0x8b   :  { %v236_v13 = vadd.f32 %v235_v12, %v234_v11 }
  0x8d   :  { %578 = vrcp.f32 %v236_v13 }
  0x93   :  { %v579_v14 = vpop.eup %578 }
  0x94   :  { %v238_v15 = vmul.f32 %v579_v14, %v236_v13 }
  0x96   :  { %v239_v16 = vsub.f32 2.0, %v238_v15 }
  0x98   :  { %v240_v17 = vmul.f32 %v579_v14, %v239_v16  ;;  %v410_v16 = vstv %s557_s26 }
  0x9a   :  { %v241_v21 = vmul.f32 %v240_v17, %v227_v9  ;;  %v242_v22 = vmul.f32 %v240_v17, %v232_v10  ;;  %v243_v23 = vmul.f32 %v240_v17, %v234_v11  ;;  %v258_v11 = vstv %s953_s12 }
  0x9b   :  { %vm259_vm1 = vcmp.lt.f32.partialorder %v922_v46, %v258_v11  ;;  %vm1006_vm5 = vcmp.gt.f32.partialorder %v922_v46, %v258_v11 }
  0x9c   :  { %v244_v28 = vsel %vm890_vm12, %v241_v21, %v225_v59  ;;  %v246_v29 = vsel %vm890_vm12, %v242_v22, %v230_v61  ;;  %v248_v30 = vsel %vm890_vm12, %v243_v23, %v233_v0  ;;  %vm972_vm3 = vmand %vm257_vm0, %vm259_vm1  ;;  %v333_v21 = vstv %s545_s15 }
  0x9d   :  { %v245_v20 = vsel %vm895_vm13, %v244_v28, %v212_v2  ;;  %v247_v31 = vsel %vm895_vm13, %v246_v29, %v214_v3  ;;  %v249_v32 = vsel %vm895_vm13, %v248_v30, %v216_v4  ;;  %v335_v22 = vstv %s955_s13  ;;  %vm1001_vm4 = vmor %vm968_vm2, %vm972_vm3 }
  0x9e   :  { %v268_v34 = vmul.f32 %v267_v24, %v245_v20  ;;  %v270_v35 = vmul.f32 %v269_v25, %v249_v32  ;;  %v273_v36 = vmul.f32 %v272_v26, %v247_v31  ;;  %v275_v37 = vmul.f32 %v274_v27, %v249_v32  ;;  %vm1040_vm6 = vmor %vm1001_vm4, %vm1006_vm5 }
  0x9f   :  { %v278_v40 = vmul.f32 %v277_v33, %v249_v32  ;;  %v338_v23 = vstv %s546_s16  ;;  %v340_v24 = vstv %s957_s14 }
  0xa0   :  { %v271_v38 = vadd.f32 %v270_v35, %v268_v34  ;;  %v276_v39 = vadd.f32 %v275_v37, %v273_v36 }
  0xa2   :  { %v279_v41 = vadd.f32 %v276_v39, %v271_v38 }
  0xa4   :  { %v280_v42 = vadd.f32 %v279_v41, %v278_v40 }
  0xa6   :  { %580 = vrcp.f32 %v280_v42 }
  0xac   :  { %v581_v43 = vpop.eup %580 }
  0xad   :  { %v282_v44 = vmul.f32 %v581_v43, %v280_v42 }
  0xaf   :  { %v283_v45 = vsub.f32 2.0, %v282_v44 }
  0xb1   :  { %v284_v48 = vmul.f32 %v581_v43, %v283_v45 }
  0xb3   :  { %v285_v51 = vmul.f32 %v284_v48, %v271_v38  ;;  %v286_v52 = vmul.f32 %v284_v48, %v276_v39  ;;  %v287_v53 = vmul.f32 %v284_v48, %v278_v40 }
  0xb5   :  { %v288_v58 = vsel %vm929_vm14, %v285_v51, %v269_v25  ;;  %v290_v59 = vsel %vm929_vm14, %v286_v52, %v274_v27  ;;  %v292_v60 = vsel %vm929_vm14, %v287_v53, %v277_v33  ;;  %v379_v51 = vstv %s991_s18 }
  0xb6   :  { %v289_v61 = vsel %vm934_vm15, %v288_v58, %v245_v20  ;;  %v291_v62 = vsel %vm934_vm15, %v290_v59, %v247_v31  ;;  %v293_v63 = vsel %vm934_vm15, %v292_v60, %v249_v32  ;;  %v343_v20 = vstv %s960_s17 }
  0xb7   :  { %v301_v2 = vmul.f32 %v300_v54, %v289_v61  ;;  %v303_v3 = vmul.f32 %v302_v55, %v293_v63  ;;  %v306_v4 = vmul.f32 %v305_v56, %v291_v62  ;;  %v308_v0 = vmul.f32 %v307_v57, %v293_v63 }
  0xb8   :  { %v311_v7 = vmul.f32 %v310_v1, %v293_v63  ;;  %v382_v52 = vstv %s553_s23  ;;  %v384_v53 = vstv %s993_s19  ;;  %v387_v59 = vstv %s995_s24 }
  0xb9   :  { %v304_v5 = vadd.f32 %v303_v3, %v301_v2  ;;  %v309_v6 = vadd.f32 %v308_v0, %v306_v4 }
  0xbb   :  { %v312_v8 = vadd.f32 %v309_v6, %v304_v5 }
  0xbd   :  { %v313_v9 = vadd.f32 %v312_v8, %v311_v7  ;;  %v1033_v8 = vld [vmem:[#allocation2 + $0x18] sm:$0xff] }
  0xbf   :  { %582 = vrcp.f32 %v313_v9 }
  0xc5   :  { %v583_v10 = vpop.eup %582 }
  0xc6   :  { %v315_v12 = vmul.f32 %v583_v10, %v313_v9  ;;  %v365_v9 = vstv %s1025_s0 }
  0xc7   :  { %vm1045_vm7 = vcmp.le.f32.partialorder %v1033_v8, %v365_v9  ;;  %vm367_vm8 = vcmp.ge.f32.partialorder %v1033_v8, %v365_v9 }
  0xc8   :  { %v316_v13 = vsub.f32 2.0, %v315_v12  ;;  %vm1077_vm10 = vmor %vm1040_vm6, %vm1045_vm7 }
  0xca   :  { %v317_v14 = vmul.f32 %v583_v10, %v316_v13 }
  0xcc   :  { %v318_v17 = vmul.f32 %v317_v14, %v304_v5  ;;  %v319_v18 = vmul.f32 %v317_v14, %v309_v6  ;;  %v320_v19 = vmul.f32 %v317_v14, %v311_v7 }
  0xce   :  { %v321_v25 = vsel %vm968_vm2, %v318_v17, %v302_v55  ;;  %v323_v26 = vsel %vm968_vm2, %v319_v18, %v307_v57  ;;  %v325_v27 = vsel %vm968_vm2, %v320_v19, %v310_v1  ;;  %v412_v17 = vstv %s1027_s25 }
  0xcf   :  { %v322_v28 = vsel %vm972_vm3, %v321_v25, %v289_v61  ;;  %v324_v29 = vsel %vm972_vm3, %v323_v26, %v291_v62  ;;  %v326_v30 = vsel %vm972_vm3, %v325_v27, %v293_v63  ;;  %v415_v18 = vstv %s558_s27 }
  0xd0   :  { %v334_v31 = vmul.f32 %v333_v21, %v322_v28  ;;  %v336_v32 = vmul.f32 %v335_v22, %v326_v30  ;;  %v339_v33 = vmul.f32 %v338_v23, %v324_v29  ;;  %v341_v34 = vmul.f32 %v340_v24, %v326_v30 }
  0xd1   :  { %v344_v37 = vmul.f32 %v343_v20, %v326_v30  ;;  %v417_v19 = vstv %s1029_s1  ;;  %v420_v27 = vstv %s1031_s28 }
  0xd2   :  { %v337_v35 = vadd.f32 %v336_v32, %v334_v31  ;;  %v342_v36 = vadd.f32 %v341_v34, %v339_v33 }
  0xd4   :  { %v345_v38 = vadd.f32 %v342_v36, %v337_v35 }
  0xd6   :  { %v346_v39 = vadd.f32 %v345_v38, %v344_v37 }
  0xd8   :  { %584 = vrcp.f32 %v346_v39 }
  0xde   :  { %v585_v40 = vpop.eup %584 }
  0xdf   :  { %v348_v41 = vmul.f32 %v585_v40, %v346_v39 }
  0xe1   :  { %v349_v42 = vsub.f32 2.0, %v348_v41 }
  0xe3   :  { %v350_v43 = vmul.f32 %v585_v40, %v349_v42 }
  0xe5   :  { %v351_v47 = vmul.f32 %v350_v43, %v337_v35  ;;  %v352_v48 = vmul.f32 %v350_v43, %v342_v36  ;;  %v353_v49 = vmul.f32 %v350_v43, %v344_v37  ;;  %v368_v37 = vstv %s1064_s29 }
  0xe6   :  { %vm369_vm9 = vcmp.lt.f32.partialorder %v1033_v8, %v368_v37  ;;  %vm371_vm13 = vcmp.gt.f32.partialorder %v1033_v8, %v368_v37 }
  0xe7   :  { %v354_v54 = vsel %vm1001_vm4, %v351_v47, %v335_v22  ;;  %v356_v55 = vsel %vm1001_vm4, %v352_v48, %v340_v24  ;;  %v358_v56 = vsel %vm1001_vm4, %v353_v49, %v343_v20  ;;  %vm1081_vm11 = vmand %vm367_vm8, %vm369_vm9  ;;  %v443_v47 = vstv %s562_s4 }
  0xe8   :  { %v355_v46 = vsel %vm1006_vm5, %v354_v54, %v322_v28  ;;  %v357_v57 = vsel %vm1006_vm5, %v356_v55, %v324_v29  ;;  %v359_v58 = vsel %vm1006_vm5, %v358_v56, %v326_v30  ;;  %v445_v48 = vstv %s1066_s2  ;;  %vm437_vm12 = vmor %vm1077_vm10, %vm1081_vm11 }
  0xe9   :  { %v378_v60 = vmul.f32 %v377_v50, %v355_v46  ;;  %v380_v61 = vmul.f32 %v379_v51, %v359_v58  ;;  %v383_v62 = vmul.f32 %v382_v52, %v357_v57  ;;  %v385_v63 = vmul.f32 %v384_v53, %v359_v58 }
  0xea   :  { %v388_v3 = vmul.f32 %v387_v59, %v359_v58  ;;  %v448_v49 = vstv %s563_s5  ;;  %v450_v50 = vstv %s1068_s30 }
  0xeb   :  { %v381_v1 = vadd.f32 %v380_v61, %v378_v60  ;;  %v386_v2 = vadd.f32 %v385_v63, %v383_v62 }
  0xed   :  { %v389_v4 = vadd.f32 %v386_v2, %v381_v1 }
  0xef   :  { %v390_v0 = vadd.f32 %v389_v4, %v388_v3 }
  0xf1   :  { %586 = vrcp.f32 %v390_v0 }
  0xf7   :  { %v587_v5 = vpop.eup %586 }
  0xf8   :  { %v392_v6 = vmul.f32 %v587_v5, %v390_v0 }
  0xfa   :  { %v393_v7 = vsub.f32 2.0, %v392_v6 }
  0xfc   :  { %v394_v10 = vmul.f32 %v587_v5, %v393_v7 }
  0xfe   :  { %v395_v13 = vmul.f32 %v394_v10, %v381_v1  ;;  %v396_v14 = vmul.f32 %v394_v10, %v386_v2  ;;  %v397_v15 = vmul.f32 %v394_v10, %v388_v3 }
 0x100   :  { %v398_v21 = vsel %vm1040_vm6, %v395_v13, %v379_v51  ;;  %v400_v22 = vsel %vm1040_vm6, %v396_v14, %v384_v53  ;;  %v402_v23 = vsel %vm1040_vm6, %v397_v15, %v387_v59 }
 0x101   :  { %v399_v24 = vsel %vm1045_vm7, %v398_v21, %v355_v46  ;;  %v401_v25 = vsel %vm1045_vm7, %v400_v22, %v357_v57  ;;  %v403_v26 = vsel %vm1045_vm7, %v402_v23, %v359_v58  ;;  %v453_v46 = vstv %s561_s6 }
 0x102   :  { %v411_v28 = vmul.f32 %v410_v16, %v399_v24  ;;  %v413_v29 = vmul.f32 %v412_v17, %v403_v26  ;;  %v416_v30 = vmul.f32 %v415_v18, %v401_v25  ;;  %v418_v20 = vmul.f32 %v417_v19, %v403_v26 }
 0x103   :  { %v421_v33 = vmul.f32 %v420_v27, %v403_v26 }
 0x104   :  { %v414_v31 = vadd.f32 %v413_v29, %v411_v28  ;;  %v419_v32 = vadd.f32 %v418_v20, %v416_v30 }
 0x106   :  { %v422_v34 = vadd.f32 %v419_v32, %v414_v31 }
 0x108   :  { %v423_v35 = vadd.f32 %v422_v34, %v421_v33 }
 0x10a   :  { %588 = vrcp.f32 %v423_v35 }
 0x110   :  { %v589_v36 = vpop.eup %588 }
 0x111   :  { %v425_v38 = vmul.f32 %v589_v36, %v423_v35 }
 0x113   :  { %v426_v39 = vsub.f32 2.0, %v425_v38 }
 0x115   :  { %v427_v40 = vmul.f32 %v589_v36, %v426_v39 }
 0x117   :  { %v428_v43 = vmul.f32 %v427_v40, %v414_v31  ;;  %v429_v44 = vmul.f32 %v427_v40, %v419_v32  ;;  %v430_v45 = vmul.f32 %v427_v40, %v421_v33 }
 0x119   :  { %v431_v51 = vsel %vm1077_vm10, %v428_v43, %v412_v17  ;;  %v433_v52 = vsel %vm1077_vm10, %v429_v44, %v417_v19  ;;  %v435_v53 = vsel %vm1077_vm10, %v430_v45, %v420_v27 }
 0x11a   :  { %v432_v54 = vsel %vm1081_vm11, %v431_v51, %v399_v24  ;;  %v434_v55 = vsel %vm1081_vm11, %v433_v52, %v401_v25  ;;  %v436_v56 = vsel %vm1081_vm11, %v435_v53, %v403_v26 }
 0x11b   :  { %v444_v57 = vmul.f32 %v443_v47, %v432_v54  ;;  %v446_v58 = vmul.f32 %v445_v48, %v436_v56  ;;  %v449_v59 = vmul.f32 %v448_v49, %v434_v55  ;;  %v451_v60 = vmul.f32 %v450_v50, %v436_v56 }
 0x11c   :  { %v454_v63 = vmul.f32 %v453_v46, %v436_v56 }
 0x11d   :  { %v447_v61 = vadd.f32 %v446_v58, %v444_v57  ;;  %v452_v62 = vadd.f32 %v451_v60, %v449_v59 }
 0x11f   :  { %v455_v1 = vadd.f32 %v452_v62, %v447_v61 }
 0x121   :  { %v456_v2 = vadd.f32 %v455_v1, %v454_v63 }
 0x123   :  { %590 = vrcp.f32 %v456_v2 }
 0x129   :  { %v591_v3 = vpop.eup %590 }
 0x12a   :  { %v458_v4 = vmul.f32 %v591_v3, %v456_v2 }
 0x12c   :  { %v459_v0 = vsub.f32 2.0, %v458_v4 }
 0x12e   :  { %v460_v5 = vmul.f32 %v591_v3, %v459_v0 }
 0x130   :  { %v461_v6 = vmul.f32 %v460_v5, %v447_v61  ;;  %v462_v7 = vmul.f32 %v460_v5, %v452_v62 }
 0x132   :  { %v463_v9 = vsel %vm437_vm12, %v461_v6, %v445_v48  ;;  %v465_v10 = vsel %vm437_vm12, %v462_v7, %v450_v50 }
 0x133   :  { %v464_v11 = vsel %vm371_vm13, %v463_v9, %v432_v54  ;;  %v466_v12 = vsel %vm371_vm13, %v465_v10, %v434_v55 }
 0x134   :  { %v467_v13 = vsub.f32 %v466_v12, %v464_v11 }
 0x136   :  { %v468_v14 = vmul.f32 1.442695, %v467_v13 }
 0x138   :  { %592 = vpow2.f32 %v468_v14 }
 0x13e   :  { %v593_v15 = vpop.eup %592 }
 0x13f   :  { %v470_v16 = vadd.f32 1.0, %v593_v15 }
 0x141   :  { %594 = vrcp.f32 %v470_v16 }
 0x147   :  { %v595_v17 = vpop.eup %594 }
 0x148   :  { %v472_v18 = vmul.f32 %v595_v17, %v470_v16 }
 0x14a   :  { %v473_v19 = vsub.f32 2.0, %v472_v18 }
 0x14c   :  { %v474_v8 = vmul.f32 %v595_v17, %v473_v19 }
 0x14e   :  { %475 = vst [vmem:[#allocation9] sm:$0xff] %v474_v8  ;;  %v476_v21 = vmul.f32 %v593_v15, %v474_v8 }
 0x150   :  { %478 = vst [vmem:[#allocation9 + $0x8] sm:$0xff] %v476_v21 }
 0x151   :  { %491 = dma.vmem_to_hbm [thread:$0]  %s484_s8, 256, %s486_s11, [#allocation4], %s677_s20, %s677_s20, %s678_s21  }
 0x152   :  { %674 = dma.done.wait [#allocation4], 256  }
 0x153   :  { %675 = vsyncadd [#allocation4], 4294967040 }
 0x154   :  { %496 = vsyncpa [#allocation3], 1 }
 0x155   :  { %497 = vsyncpa [#allocation4], 1 }
 0x156   :  { %498 = vsyncpa [#allocation5], 1 }
 0x157   :  { %499 = vsyncpa [#allocation6], 1 }

</bundles_post_ra>
